<compile_context>
chip_gen: v6e
topology: v6e:2x2x1
jax: 0.10.0
libtpu: 0.0.40
codegen_flags: <defaults>
</compile_context>

<pallas_src>
import functools

import jax
import jax.numpy as jnp
from jax.experimental import pallas as pl
from jax.experimental.pallas import tpu as pltpu

NEG_SLOPE = 0.2      # GATv2Conv default leaky-relu slope
BN_EPS = 1e-5        # BatchNorm1d default eps
BIG_NEG = -1e30      # masked-softmax additive fill (exp underflows to exactly 0)
LANE = 128           # TPU lane width

# f32 keeps the tight numerical self-check against the f32 torch-semantics reference.
# Switch to jnp.bfloat16 for higher MXU throughput at non-toy shapes (loosen the assert).
MXU_DTYPE = jnp.float32

# Row indices inside the packed [16, LANE] row-vector operand.
ROW_BL1, ROW_BR1, ROW_ATT1, ROW_BIAS1 = 0, 1, 2, 3
ROW_GAMMA, ROW_BETA = 4, 5
ROW_BLM, ROW_BRM, ROW_ATTM, ROW_BIASM = 6, 7, 8, 9
NUM_ROWS = 16        # padded to a multiple of 8 sublanes


def _round_up(n, m):
    return ((n + m - 1) // m) * m


def _pad2(a, rows, cols):
    return jnp.pad(a, ((0, rows - a.shape[0]), (0, cols - a.shape[1])))


# ----------------------------------------------------------------------------- kernel

def matrix_gatvae_mt_kernel(x_ref, mask_ref, w1_ref, wm_ref, rows_ref, mu_ref,
                            *, Hp, Lp):
    """One graph per grid step: [N, Kp] nodes -> [N, Lp] mu."""
    x = x_ref[...]          # [N, Kp]  flattened per-node signal (lane-padded)
    mask = mask_ref[...]    # [N, N]   additive softmax mask: 0 on edges, BIG_NEG else
    rows = rows_ref[...]    # [16, LANEmax] packed row-vector operands

    def mm(a, b):
        return jnp.dot(a.astype(MXU_DTYPE), b.astype(MXU_DTYPE),
                       preferred_element_type=jnp.float32)

    def attend(gl, gr, att, bias):
        """Dense GATv2 attention, heads=1.

        gl = lin_l(x) (scores + messages), gr = lin_r(x) (targets),
        att/bias: [1, D] rows (lane-padded with zeros).
        """
        s = gl[None, :, :] + gr[:, None, :]             # [N_tgt, N_src, D]
        s = jnp.where(s > 0, s, NEG_SLOPE * s)          # LeakyReLU(0.2)
        e = jnp.sum(s * att[None, :, :], axis=-1)       # [N_tgt, N_src]
        e = e + mask                                    # additive adjacency mask
        m = jnp.max(e, axis=-1, keepdims=True)
        w = jnp.exp(e - m)
        inv = pl.reciprocal(jnp.sum(w, axis=-1, keepdims=True), approx=False)
        alpha = w * inv
        return mm(alpha, gl) + bias                     # sum_j alpha_ij * lin_l(x)_j

    # gat1: Conv1d(1,64,24,stride=24) + torch `.view(N,-1)` interleave are folded into
    # the projection weights; lin_l/lin_r packed into ONE [Kp, 2*Hp] matmul.
    p1 = mm(x, w1_ref[...])                             # [N, 2*Hp]
    gl1 = p1[:, :Hp] + rows[ROW_BL1:ROW_BL1 + 1, :Hp]
    gr1 = p1[:, Hp:] + rows[ROW_BR1:ROW_BR1 + 1, :Hp]

    h = attend(gl1, gr1, rows[ROW_ATT1:ROW_ATT1 + 1, :Hp],
               rows[ROW_BIAS1:ROW_BIAS1 + 1, :Hp])
    h = jnp.maximum(h, 0.0)

    # BatchNorm1d(hidden) — training-mode batch statistics over this graph's N nodes
    # (a freshly-constructed torch module is in train() mode; one graph per forward).
    mean = jnp.mean(h, axis=0, keepdims=True)
    var = jnp.mean((h - mean) ** 2, axis=0, keepdims=True)
    h = ((h - mean) * jax.lax.rsqrt(var + BN_EPS)
         * rows[ROW_GAMMA:ROW_GAMMA + 1, :Hp] + rows[ROW_BETA:ROW_BETA + 1, :Hp])

    # fc_mu (GATv2Conv(hidden, latent)), lin_l/lin_r again packed into one matmul.
    pm = mm(h, wm_ref[...])                             # [N, 2*Lp]
    glm = pm[:, :Lp] + rows[ROW_BLM:ROW_BLM + 1, :Lp]
    grm = pm[:, Lp:] + rows[ROW_BRM:ROW_BRM + 1, :Lp]
    mu_ref[...] = attend(glm, grm, rows[ROW_ATTM:ROW_ATTM + 1, :Lp],
                         rows[ROW_BIASM:ROW_BIASM + 1, :Lp])
    # TODO(synk): fc_logvar / decoder / classifier heads never reach forward(); skipped.


# ----------------------------------------------------------------------------- glue

def _dense_adj(edge_index, n):
    """adj[i, j] = 1 iff edge j -> i; remove then re-add self loops (GATv2 default)."""
    src, dst = edge_index[0], edge_index[1]
    adj = jnp.zeros((n, n), jnp.float32).at[dst, src].set(1.0)
    eye = jnp.eye(n, dtype=jnp.float32)
    return adj * (1.0 - eye) + eye


def init_params(key, in_channels, hidden_channels, latent_dim):
    """Deterministic synthetic parameters in torch layouts ([out, in] linear weights)."""
    oc, kw = 64, 24
    ks = jax.random.split(key, 14)
    w = lambda k, shape: 0.1 * jax.random.normal(k, shape, jnp.float32)
    return dict(
        wc=w(ks[0], (oc, kw)), bc=w(ks[1], (oc,)),                       # Conv1d(1,64,24)
        Wl1=w(ks[2], (hidden_channels, in_channels)), bl1=w(ks[3], (hidden_channels,)),
        Wr1=w(ks[4], (hidden_channels, in_channels)), br1=w(ks[5], (hidden_channels,)),
        att1=w(ks[6], (hidden_channels,)), bias1=w(ks[7], (hidden_channels,)),
        gamma=jnp.ones((hidden_channels,), jnp.float32),                 # BN defaults
        beta=jnp.zeros((hidden_channels,), jnp.float32),
        Wlm=w(ks[8], (latent_dim, hidden_channels)), blm=w(ks[9], (latent_dim,)),
        Wrm=w(ks[10], (latent_dim, hidden_channels)), brm=w(ks[11], (latent_dim,)),
        attm=w(ks[12], (latent_dim,)), biasm=w(ks[13], (latent_dim,)),
    )


def prepare_kernel_params(params, flat_len):
    """One-time weight folding / padding / packing (hoisted out of the forward path).

    Conv1d(1,64,24,stride=24) + torch `.view(N,-1)` interleave are folded into the
    GAT1 lin_l / lin_r weights, then lin_l/lin_r of each GAT layer are concatenated
    along the output dim and zero-padded to dense 128-lane tiles.
    """
    oc, kw = params["wc"].shape
    K = flat_len
    P = K // kw                          # conv output positions (64*P == gat1 in_channels)
    hidden = params["Wl1"].shape[0]
    latent = params["Wlm"].shape[0]

    wc_t = params["wc"].T                # [24, 64]
    bc = params["bc"]                    # [64]

    def fuse(W, b):
        # W: torch [hidden, 64*P].  Conv `.view(N,-1)` feature index is o*P + p, so the
        # chunk of W.T feeding conv position p is rows p::P.  Folding the conv matmul:
        #   gl = sum_p (x[:, p*24:(p+1)*24] @ wc^T + bc) @ Wt[p::P] + b
        #      = x_flat @ concat_p(wc^T @ Wt[p::P]) + (b + sum_p bc @ Wt[p::P])
        Wt = W.T
        Wf = jnp.concatenate([wc_t @ Wt[p::P] for p in range(P)], axis=0)   # [P*24, hidden]
        bf = b + sum(bc @ Wt[p::P] for p in range(P))                       # [hidden]
        return Wf, bf

    Wl_f, bl_f = fuse(params["Wl1"], params["bl1"])
    Wr_f, br_f = fuse(params["Wr1"], params["br1"])

    Kp = _round_up(K, LANE)
    Hp = _round_up(hidden, LANE)
    Lp = _round_up(latent, LANE)
    Wmax = max(Hp, Lp)

    # lin_l || lin_r packed along the output dim (each half 128-lane aligned).
    W1p = jnp.concatenate([_pad2(Wl_f, Kp, Hp), _pad2(Wr_f, Kp, Hp)], axis=1)  # [Kp, 2Hp]
    Wmp = jnp.concatenate([_pad2(params["Wlm"].T, Hp, Lp),
                           _pad2(params["Wrm"].T, Hp, Lp)], axis=1)            # [Hp, 2Lp]

    def rowvec(v, width):
        return jnp.pad(v, (0, width - v.shape[0]))

    rows = jnp.zeros((NUM_ROWS, Wmax), jnp.float32)
    rows = rows.at[ROW_BL1].set(rowvec(bl_f, Wmax))
    rows = rows.at[ROW_BR1].set(rowvec(br_f, Wmax))
    rows = rows.at[ROW_ATT1].set(rowvec(params["att1"], Wmax))
    rows = rows.at[ROW_BIAS1].set(rowvec(params["bias1"], Wmax))
    rows = rows.at[ROW_GAMMA].set(rowvec(params["gamma"], Wmax))
    rows = rows.at[ROW_BETA].set(rowvec(params["beta"], Wmax))
    rows = rows.at[ROW_BLM].set(rowvec(params["blm"], Wmax))
    rows = rows.at[ROW_BRM].set(rowvec(params["brm"], Wmax))
    rows = rows.at[ROW_ATTM].set(rowvec(params["attm"], Wmax))
    rows = rows.at[ROW_BIASM].set(rowvec(params["biasm"], Wmax))

    return dict(W1p=W1p, Wmp=Wmp, rows=rows,
                K=K, Kp=Kp, Hp=Hp, Lp=Lp, hidden=hidden, latent=latent)


def matrix_gatvae_mt_forward(x_batch, edge_index, kparams):
    """x_batch: [G, N, C, T] -> mu: [G, N, latent].  One graph per grid step."""
    G, N = x_batch.shape[0], x_batch.shape[1]
    Kp, Hp, Lp = kparams["Kp"], kparams["Hp"], kparams["Lp"]
    latent = kparams["latent"]
    Wmax = kparams["rows"].shape[1]

    # torch: x.transpose(1, 2).flatten(1), per graph; graphs stacked along rows.
    x_flat = jnp.transpose(x_batch, (0, 1, 3, 2)).reshape(G * N, -1)
    x_flat = _pad2(x_flat, G * N, Kp)

    mask_bias = (1.0 - _dense_adj(edge_index, N)) * BIG_NEG   # additive softmax mask
    # TODO(synk): at large N build the mask in-kernel from a compact adjacency (edge
    # list / bitmask via scalar prefetch) instead of shipping a dense [N,N] f32 input.

    kernel = functools.partial(matrix_gatvae_mt_kernel, Hp=Hp, Lp=Lp)

    mu_padded = pl.pallas_call(
        kernel,
        out_shape=jax.ShapeDtypeStruct((G * N, Lp), jnp.float32),
        grid=(G,),
        in_specs=[
            pl.BlockSpec((N, Kp), lambda g: (g, 0)),          # per-graph node block
            pl.BlockSpec((N, N), lambda g: (0, 0)),           # shared mask (resident)
            pl.BlockSpec((Kp, 2 * Hp), lambda g: (0, 0)),     # gat1 lin_l||lin_r (resident)
            pl.BlockSpec((Hp, 2 * Lp), lambda g: (0, 0)),     # fc_mu lin_l||lin_r (resident)
            pl.BlockSpec((NUM_ROWS, Wmax), lambda g: (0, 0)), # packed row vectors (resident)
        ],
        out_specs=pl.BlockSpec((N, Lp), lambda g: (g, 0)),
        compiler_params=pltpu.CompilerParams(
            dimension_semantics=("parallel",)),               # shard graphs across TCs
    )(x_flat, mask_bias, kparams["W1p"], kparams["Wmp"], kparams["rows"])

    return mu_padded[:, :latent].reshape(G, N, latent)


# ----------------------------------------------------------------------------- reference

def reference_forward(x, edge_index, params):
    """Pure-JAX f32 torch-semantics reference for ONE graph x: [N, C, T]."""
    n = x.shape[0]
    hp = jax.lax.Precision.HIGHEST
    xf = jnp.transpose(x, (0, 2, 1)).reshape(n, -1)
    oc, kw = params["wc"].shape
    P = xf.shape[1] // kw
    conv = jnp.stack(
        [jnp.dot(xf[:, p * kw:(p + 1) * kw], params["wc"].T, precision=hp) + params["bc"]
         for p in range(P)], axis=-1)                    # [N, 64, P]
    h0 = conv.reshape(n, -1)                             # torch .view(N, -1): index o*P + p
    adj = _dense_adj(edge_index, n)

    def gat(z, wl, bl, wr, br, att, bias):
        gl = jnp.dot(z, wl.T, precision=hp) + bl
        gr = jnp.dot(z, wr.T, precision=hp) + br
        s = gl[None, :, :] + gr[:, None, :]
        s = jnp.where(s > 0, s, NEG_SLOPE * s)
        e = jnp.sum(s * att, axis=-1)
        e = jnp.where(adj > 0, e, BIG_NEG)
        a = jax.nn.softmax(e, axis=-1)
        return jnp.dot(a, gl, precision=hp) + bias

    h = gat(h0, params["Wl1"], params["bl1"], params["Wr1"], params["br1"],
            params["att1"], params["bias1"])
    h = jnp.maximum(h, 0.0)
    mean = h.mean(axis=0)
    var = ((h - mean) ** 2).mean(axis=0)
    h = (h - mean) / jnp.sqrt(var + BN_EPS) * params["gamma"] + params["beta"]
    return gat(h, params["Wlm"], params["blm"], params["Wrm"], params["brm"],
               params["attm"], params["biasm"])


# ----------------------------------------------------------------------------- main

if __name__ == "__main__":
    key = jax.random.PRNGKey(0)
    kx, kp = jax.random.split(key)

    # Small shapes consistent with the module:
    #   G=8 graphs, nodes N=8, per-node signal [C=24, T=2] -> flatten length 48
    #   Conv1d(1,64,24,stride=24) -> 2 positions -> gat1 in_channels = 128
    G, N, C, T = 8, 8, 24, 2
    in_channels = 64 * ((C * T) // 24)     # 128
    hidden_channels, latent_dim = 32, 16

    x = jax.random.normal(kx, (G, N, C, T), jnp.float32)
    idx = jnp.arange(N, dtype=jnp.int32)
    edge_index = jnp.stack([                          # bidirectional ring graph
        jnp.concatenate([idx, (idx + 1) % N]),
        jnp.concatenate([(idx + 1) % N, idx]),
    ]).astype(jnp.int32)

    params = init_params(kp, in_channels, hidden_channels, latent_dim)
    kparams = prepare_kernel_params(params, flat_len=C * T)   # one-time prep (hoisted)

    mu = matrix_gatvae_mt_forward(x, edge_index, kparams)
    mu = jax.block_until_ready(mu)

    ref = jnp.stack([reference_forward(x[g], edge_index, params) for g in range(G)])
    assert mu.shape == (G, N, latent_dim), mu.shape
    assert jnp.allclose(mu, ref, atol=1e-3, rtol=1e-3), float(jnp.max(jnp.abs(mu - ref)))
    print("KERNEL_OK")
</pallas_src>

<mosaic_0001>
module attributes {stable_mosaic.version = 11 : i64} {
  func.func @matrix_gatvae_mt_kernel(%arg0: i32, %arg1: memref<8x128xf32, #tpu.memory_space<vmem>>, %arg2: memref<8x8xf32, #tpu.memory_space<vmem>>, %arg3: memref<128x256xf32, #tpu.memory_space<vmem>>, %arg4: memref<128x256xf32, #tpu.memory_space<vmem>>, %arg5: memref<16x128xf32, #tpu.memory_space<vmem>>, %arg6: memref<8x128xf32, #tpu.memory_space<vmem>>) attributes {dimension_semantics = [#tpu.dimension_semantics<parallel>], iteration_bounds = array<i64: 8>, scalar_prefetch = 0 : i64, scratch_operands = 0 : i64, tpu.core_type = #tpu.core_type<tc>, window_params = [{transform_indices = @transform_0, window_bounds = array<i64: 8, 128>}, {pipeline_mode = #tpu.pipeline_mode<synchronous>, transform_indices = @transform_1, window_bounds = array<i64: 8, 8>}, {pipeline_mode = #tpu.pipeline_mode<synchronous>, transform_indices = @transform_2, window_bounds = array<i64: 128, 256>}, {pipeline_mode = #tpu.pipeline_mode<synchronous>, transform_indices = @transform_3, window_bounds = array<i64: 128, 256>}, {pipeline_mode = #tpu.pipeline_mode<synchronous>, transform_indices = @transform_4, window_bounds = array<i64: 16, 128>}, {transform_indices = @transform_5, window_bounds = array<i64: 8, 128>}]} {
    %c0 = arith.constant 0 : index
    %c0_0 = arith.constant 0 : index
    %0 = vector.load %arg1[%c0, %c0_0] : memref<8x128xf32, #tpu.memory_space<vmem>>, vector<8x128xf32>
    %c0_1 = arith.constant 0 : index
    %c0_2 = arith.constant 0 : index
    %1 = vector.load %arg2[%c0_1, %c0_2] : memref<8x8xf32, #tpu.memory_space<vmem>>, vector<8x8xf32>
    %c0_3 = arith.constant 0 : index
    %c0_4 = arith.constant 0 : index
    %2 = vector.load %arg5[%c0_3, %c0_4] : memref<16x128xf32, #tpu.memory_space<vmem>>, vector<16x128xf32>
    %c0_5 = arith.constant 0 : index
    %c0_6 = arith.constant 0 : index
    %3 = vector.load %arg3[%c0_5, %c0_6] : memref<128x256xf32, #tpu.memory_space<vmem>>, vector<128x256xf32>
    %cst = arith.constant dense<0.000000e+00> : vector<8x256xf32>
    %4 = tpu.matmul %0, %3, %cst {dimension_numbers = #tpu.dot_dimension_numbers<[1], [0], [0], [1], [0, 0, 1, 1], [], []>} : vector<8x128xf32>, vector<128x256xf32>, vector<8x256xf32> -> vector<8x256xf32>
    %5 = vector.extract_strided_slice %4 {offsets = [0, 0], sizes = [8, 128], strides = [1, 1]} : vector<8x256xf32> to vector<8x128xf32>
    %6 = vector.extract_strided_slice %2 {offsets = [0, 0], sizes = [1, 128], strides = [1, 1]} : vector<16x128xf32> to vector<1x128xf32>
    %7 = vector.broadcast %6 : vector<1x128xf32> to vector<8x128xf32>
    %8 = arith.addf %5, %7 : vector<8x128xf32>
    %9 = vector.extract_strided_slice %4 {offsets = [0, 128], sizes = [8, 128], strides = [1, 1]} : vector<8x256xf32> to vector<8x128xf32>
    %10 = vector.extract_strided_slice %2 {offsets = [1, 0], sizes = [1, 128], strides = [1, 1]} : vector<16x128xf32> to vector<1x128xf32>
    %11 = vector.broadcast %10 : vector<1x128xf32> to vector<8x128xf32>
    %12 = arith.addf %9, %11 : vector<8x128xf32>
    %13 = vector.extract_strided_slice %2 {offsets = [2, 0], sizes = [1, 128], strides = [1, 1]} : vector<16x128xf32> to vector<1x128xf32>
    %14 = vector.extract_strided_slice %2 {offsets = [3, 0], sizes = [1, 128], strides = [1, 1]} : vector<16x128xf32> to vector<1x128xf32>
    %15 = vector.shape_cast %8 : vector<8x128xf32> to vector<1x8x128xf32>
    %16 = vector.shape_cast %12 : vector<8x128xf32> to vector<8x1x128xf32>
    %17 = vector.broadcast %15 : vector<1x8x128xf32> to vector<8x8x128xf32>
    %18 = vector.broadcast %16 : vector<8x1x128xf32> to vector<8x8x128xf32>
    %19 = arith.addf %17, %18 : vector<8x8x128xf32>
    %cst_7 = arith.constant 0.000000e+00 : f32
    %20 = vector.broadcast %cst_7 : f32 to vector<8x8x128xf32>
    %21 = arith.cmpf ogt, %19, %20 : vector<8x8x128xf32>
    %cst_8 = arith.constant 2.000000e-01 : f32
    %22 = vector.broadcast %cst_8 : f32 to vector<8x8x128xf32>
    %23 = arith.mulf %22, %19 : vector<8x8x128xf32>
    %24 = arith.select %21, %19, %23 : vector<8x8x128xi1>, vector<8x8x128xf32>
    %25 = vector.shape_cast %13 : vector<1x128xf32> to vector<1x1x128xf32>
    %26 = vector.broadcast %25 : vector<1x1x128xf32> to vector<8x8x128xf32>
    %27 = arith.mulf %24, %26 : vector<8x8x128xf32>
    %cst_9 = arith.constant dense<0.000000e+00> : vector<8x8xf32>
    %28 = vector.multi_reduction <add>, %27, %cst_9 [2] : vector<8x8x128xf32> to vector<8x8xf32>
    %29 = arith.addf %28, %1 : vector<8x8xf32>
    %cst_10 = arith.constant dense<0xFF800000> : vector<8xf32>
    %30 = vector.multi_reduction <maximumf>, %29, %cst_10 [1] : vector<8x8xf32> to vector<8xf32>
    %31 = vector.shape_cast %30 : vector<8xf32> to vector<8x1xf32>
    %32 = vector.broadcast %31 : vector<8x1xf32> to vector<8x8xf32>
    %33 = arith.subf %29, %32 : vector<8x8xf32>
    %34 = math.exp %33 : vector<8x8xf32>
    %cst_11 = arith.constant dense<0.000000e+00> : vector<8xf32>
    %35 = vector.multi_reduction <add>, %34, %cst_11 [1] : vector<8x8xf32> to vector<8xf32>
    %36 = vector.shape_cast %35 : vector<8xf32> to vector<8x1xf32>
    %37 = tpu.reciprocal %36 : vector<8x1xf32> -> vector<8x1xf32>
    %38 = vector.broadcast %37 : vector<8x1xf32> to vector<8x8xf32>
    %39 = arith.mulf %34, %38 : vector<8x8xf32>
    %cst_12 = arith.constant dense<0.000000e+00> : vector<8x128xf32>
    %40 = tpu.matmul %39, %8, %cst_12 {dimension_numbers = #tpu.dot_dimension_numbers<[1], [0], [0], [1], [0, 0, 1, 1], [], []>} : vector<8x8xf32>, vector<8x128xf32>, vector<8x128xf32> -> vector<8x128xf32>
    %41 = vector.broadcast %14 : vector<1x128xf32> to vector<8x128xf32>
    %42 = arith.addf %40, %41 : vector<8x128xf32>
    %cst_13 = arith.constant 0.000000e+00 : f32
    %43 = vector.broadcast %cst_13 : f32 to vector<8x128xf32>
    %44 = arith.maximumf %42, %43 : vector<8x128xf32>
    %cst_14 = arith.constant dense<0.000000e+00> : vector<128xf32>
    %45 = vector.multi_reduction <add>, %44, %cst_14 [0] : vector<8x128xf32> to vector<128xf32>
    %46 = vector.shape_cast %45 : vector<128xf32> to vector<1x128xf32>
    %cst_15 = arith.constant 8.000000e+00 : f32
    %47 = vector.broadcast %cst_15 : f32 to vector<1x128xf32>
    %48 = arith.divf %46, %47 : vector<1x128xf32>
    %49 = vector.broadcast %48 : vector<1x128xf32> to vector<8x128xf32>
    %50 = arith.subf %44, %49 : vector<8x128xf32>
    %51 = arith.mulf %50, %50 : vector<8x128xf32>
    %cst_16 = arith.constant dense<0.000000e+00> : vector<128xf32>
    %52 = vector.multi_reduction <add>, %51, %cst_16 [0] : vector<8x128xf32> to vector<128xf32>
    %53 = vector.shape_cast %52 : vector<128xf32> to vector<1x128xf32>
    %cst_17 = arith.constant 8.000000e+00 : f32
    %54 = vector.broadcast %cst_17 : f32 to vector<1x128xf32>
    %55 = arith.divf %53, %54 : vector<1x128xf32>
    %56 = vector.broadcast %48 : vector<1x128xf32> to vector<8x128xf32>
    %57 = arith.subf %44, %56 : vector<8x128xf32>
    %cst_18 = arith.constant 9.99999974E-6 : f32
    %58 = vector.broadcast %cst_18 : f32 to vector<1x128xf32>
    %59 = arith.addf %55, %58 : vector<1x128xf32>
    %60 = math.rsqrt %59 : vector<1x128xf32>
    %61 = vector.broadcast %60 : vector<1x128xf32> to vector<8x128xf32>
    %62 = arith.mulf %57, %61 : vector<8x128xf32>
    %63 = vector.extract_strided_slice %2 {offsets = [4, 0], sizes = [1, 128], strides = [1, 1]} : vector<16x128xf32> to vector<1x128xf32>
    %64 = vector.broadcast %63 : vector<1x128xf32> to vector<8x128xf32>
    %65 = arith.mulf %62, %64 : vector<8x128xf32>
    %66 = vector.extract_strided_slice %2 {offsets = [5, 0], sizes = [1, 128], strides = [1, 1]} : vector<16x128xf32> to vector<1x128xf32>
    %67 = vector.broadcast %66 : vector<1x128xf32> to vector<8x128xf32>
    %68 = arith.addf %65, %67 : vector<8x128xf32>
    %c0_19 = arith.constant 0 : index
    %c0_20 = arith.constant 0 : index
    %69 = vector.load %arg4[%c0_19, %c0_20] : memref<128x256xf32, #tpu.memory_space<vmem>>, vector<128x256xf32>
    %cst_21 = arith.constant dense<0.000000e+00> : vector<8x256xf32>
    %70 = tpu.matmul %68, %69, %cst_21 {dimension_numbers = #tpu.dot_dimension_numbers<[1], [0], [0], [1], [0, 0, 1, 1], [], []>} : vector<8x128xf32>, vector<128x256xf32>, vector<8x256xf32> -> vector<8x256xf32>
    %71 = vector.extract_strided_slice %70 {offsets = [0, 0], sizes = [8, 128], strides = [1, 1]} : vector<8x256xf32> to vector<8x128xf32>
    %72 = vector.extract_strided_slice %2 {offsets = [6, 0], sizes = [1, 128], strides = [1, 1]} : vector<16x128xf32> to vector<1x128xf32>
    %73 = vector.broadcast %72 : vector<1x128xf32> to vector<8x128xf32>
    %74 = arith.addf %71, %73 : vector<8x128xf32>
    %75 = vector.extract_strided_slice %70 {offsets = [0, 128], sizes = [8, 128], strides = [1, 1]} : vector<8x256xf32> to vector<8x128xf32>
    %76 = vector.extract_strided_slice %2 {offsets = [7, 0], sizes = [1, 128], strides = [1, 1]} : vector<16x128xf32> to vector<1x128xf32>
    %77 = vector.broadcast %76 : vector<1x128xf32> to vector<8x128xf32>
    %78 = arith.addf %75, %77 : vector<8x128xf32>
    %79 = vector.extract_strided_slice %2 {offsets = [8, 0], sizes = [1, 128], strides = [1, 1]} : vector<16x128xf32> to vector<1x128xf32>
    %80 = vector.extract_strided_slice %2 {offsets = [9, 0], sizes = [1, 128], strides = [1, 1]} : vector<16x128xf32> to vector<1x128xf32>
    %81 = vector.shape_cast %74 : vector<8x128xf32> to vector<1x8x128xf32>
    %82 = vector.shape_cast %78 : vector<8x128xf32> to vector<8x1x128xf32>
    %83 = vector.broadcast %81 : vector<1x8x128xf32> to vector<8x8x128xf32>
    %84 = vector.broadcast %82 : vector<8x1x128xf32> to vector<8x8x128xf32>
    %85 = arith.addf %83, %84 : vector<8x8x128xf32>
    %cst_22 = arith.constant 0.000000e+00 : f32
    %86 = vector.broadcast %cst_22 : f32 to vector<8x8x128xf32>
    %87 = arith.cmpf ogt, %85, %86 : vector<8x8x128xf32>
    %cst_23 = arith.constant 2.000000e-01 : f32
    %88 = vector.broadcast %cst_23 : f32 to vector<8x8x128xf32>
    %89 = arith.mulf %88, %85 : vector<8x8x128xf32>
    %90 = arith.select %87, %85, %89 : vector<8x8x128xi1>, vector<8x8x128xf32>
    %91 = vector.shape_cast %79 : vector<1x128xf32> to vector<1x1x128xf32>
    %92 = vector.broadcast %91 : vector<1x1x128xf32> to vector<8x8x128xf32>
    %93 = arith.mulf %90, %92 : vector<8x8x128xf32>
    %cst_24 = arith.constant dense<0.000000e+00> : vector<8x8xf32>
    %94 = vector.multi_reduction <add>, %93, %cst_24 [2] : vector<8x8x128xf32> to vector<8x8xf32>
    %95 = arith.addf %94, %1 : vector<8x8xf32>
    %cst_25 = arith.constant dense<0xFF800000> : vector<8xf32>
    %96 = vector.multi_reduction <maximumf>, %95, %cst_25 [1] : vector<8x8xf32> to vector<8xf32>
    %97 = vector.shape_cast %96 : vector<8xf32> to vector<8x1xf32>
    %98 = vector.broadcast %97 : vector<8x1xf32> to vector<8x8xf32>
    %99 = arith.subf %95, %98 : vector<8x8xf32>
    %100 = math.exp %99 : vector<8x8xf32>
    %cst_26 = arith.constant dense<0.000000e+00> : vector<8xf32>
    %101 = vector.multi_reduction <add>, %100, %cst_26 [1] : vector<8x8xf32> to vector<8xf32>
    %102 = vector.shape_cast %101 : vector<8xf32> to vector<8x1xf32>
    %103 = tpu.reciprocal %102 : vector<8x1xf32> -> vector<8x1xf32>
    %104 = vector.broadcast %103 : vector<8x1xf32> to vector<8x8xf32>
    %105 = arith.mulf %100, %104 : vector<8x8xf32>
    %cst_27 = arith.constant dense<0.000000e+00> : vector<8x128xf32>
    %106 = tpu.matmul %105, %74, %cst_27 {dimension_numbers = #tpu.dot_dimension_numbers<[1], [0], [0], [1], [0, 0, 1, 1], [], []>} : vector<8x8xf32>, vector<8x128xf32>, vector<8x128xf32> -> vector<8x128xf32>
    %107 = vector.broadcast %80 : vector<1x128xf32> to vector<8x128xf32>
    %108 = arith.addf %106, %107 : vector<8x128xf32>
    %c0_28 = arith.constant 0 : index
    %c0_29 = arith.constant 0 : index
    %109 = vector.load %arg6[%c0_28, %c0_29] : memref<8x128xf32, #tpu.memory_space<vmem>>, vector<8x128xf32>
    tpu.vector_store %arg6[%c0_28, %c0_29], %108 {strides = array<i32>} : memref<8x128xf32, #tpu.memory_space<vmem>>, vector<8x128xf32>,
    return
  }
  func.func @transform_0(%arg0: i32) -> (i32, i32) {
    %c0_i32 = arith.constant 0 : i32
    %c0_i32_0 = arith.constant 0 : i32
    return %arg0, %c0_i32 : i32, i32
  }
  func.func @transform_1(%arg0: i32) -> (i32, i32) {
    %c0_i32 = arith.constant 0 : i32
    %c0_i32_0 = arith.constant 0 : i32
    %c0_i32_1 = arith.constant 0 : i32
    return %c0_i32, %c0_i32_0 : i32, i32
  }
  func.func @transform_2(%arg0: i32) -> (i32, i32) {
    %c0_i32 = arith.constant 0 : i32
    %c0_i32_0 = arith.constant 0 : i32
    %c0_i32_1 = arith.constant 0 : i32
    return %c0_i32, %c0_i32_0 : i32, i32
  }
  func.func @transform_3(%arg0: i32) -> (i32, i32) {
    %c0_i32 = arith.constant 0 : i32
    %c0_i32_0 = arith.constant 0 : i32
    %c0_i32_1 = arith.constant 0 : i32
    return %c0_i32, %c0_i32_0 : i32, i32
  }
  func.func @transform_4(%arg0: i32) -> (i32, i32) {
    %c0_i32 = arith.constant 0 : i32
    %c0_i32_0 = arith.constant 0 : i32
    %c0_i32_1 = arith.constant 0 : i32
    return %c0_i32, %c0_i32_0 : i32, i32
  }
  func.func @transform_5(%arg0: i32) -> (i32, i32) {
    %c0_i32 = arith.constant 0 : i32
    %c0_i32_0 = arith.constant 0 : i32
    return %arg0, %c0_i32 : i32, i32
  }
}

</mosaic_0001>

<bundles_post_ra>
// kernel: tpu_custom_call.1
= control target key start
LH: loop header
LB: loop body
LE: loop exit
PB: predicated region body
PF: predicated region fallthrough
CT: control target
= control target key end

     0   :  { %10 = vsyncpa [#allocation3], 0  ;;  %s2820_s0 = inlined_call_operand.hbm [shape: f32[64,128], index: 0, kind: input, shape index: {}]   ;;  %s2821_s1 = inlined_call_operand.hbm [shape: f32[8,8], index: 1, kind: input, shape index: {}]   ;;  %s2822_s2 = inlined_call_operand.hbm [shape: f32[128,256], index: 2, kind: input, shape index: {}]   ;;  %s2823_s3 = inlined_call_operand.hbm [shape: f32[128,256], index: 3, kind: input, shape index: {}]   ;;  %s2824_s4 = inlined_call_operand.hbm [shape: f32[16,128], index: 4, kind: input, shape index: {}]   ;;  %s2825_s5 = inlined_call_operand.hbm [shape: f32[64,128], index: 5, kind: output, shape index: {}]  }
   0x1   :  { %12 = vsyncpa [#allocation3 + $0x1], 0 }
   0x2   :  { %13 = vsyncpa [#allocation6], 0 }
   0x3   :  { %14 = vsyncpa [#allocation9], 0 }
   0x4   :  { %15 = vsyncpa [#allocation4], 0 }
   0x5   :  { %17 = vsyncpa [#allocation4 + $0x1], 0  ;;  %s2316_s18 = smov 0   ;;  %s2318_s19 = smov 0  }
   0x6   :  { %s2320_s20 = smov 0   ;;  %s2322_s21 = smov 0  }
   0x7 LB: > { %s2272_s22 = smov [#allocation5]   ;;  %s2337_s24 = sadd.s32 4294967295, %s2270_s21   ;;  %s2270_s21 = sphi %s2322_s21, %s2848_s21   ;;  %s2266_s20 = sphi %s2320_s20, %s2847_s20   ;;  %s2262_s19 = sphi %s2318_s19, %s2846_s19   ;;  %s2258_s18 = sphi %s2316_s18, %s2845_s18  }
   0x8   : > { %s177_s23 = sshll.u32 %s2272_s22, 4  ;;  %p1896_p0 = scmp.ge.s32.totalorder %s2270_s21, 1  ;;  %s178_s23 = int_to_ptr.vmem [resolvable:$true] %s177_s23 }
   0x9   : > { %p2826_p1 = scmp.eq.s32.totalorder %s2337_s24, 0  ;;  %p164_p2 = scmp.lt.s32.totalorder %s2270_s21, 9 }
   0xa   : > { %s2273_s26 = smov [#allocation8]   ;;  %s2274_s29 = smov [#allocation7]  }
   0xb   : > { %p2342_p3 = pnand %p1896_p0, %p164_p2  ;;  %s200_s27 = sshll.u32 %s2273_s26, 4  ;;  %s2354_s27 = int_to_ptr.vmem [resolvable:$true] %s200_s27 }
   0xc   : > { %s187_s30 = sshll.u32 %s2274_s29, 4  ;;  %s2077_s6 = scalar_lea.vmem %s178_s23, 128  ;;  %s2356_s30 = int_to_ptr.vmem [resolvable:$true] %s187_s30 }
   0xd   : > { %s2830_s25 = scalar_select %p2342_p3, 1, 0 }
   0xe   : > { %p1951_p4 = pneg %p2342_p3  ;;  %p2078_p7 = scmp.ne.s32.totalorder %s178_s23, %s2077_s6 }
   0xf   : > { %p2085_p10 = scmp.lt.s32.totalorder %s178_s23, %s178_s23  ;;  %p2086_p11 = scmp.lt.s32.totalorder %s2077_s6, %s2077_s6 }
  0x10   : > { %p2350_p5 = pnand %p1951_p4, %p2826_p1 }
  0x11   : > { %p2087_p12 = por %p2086_p11, %p2085_p10 }
  0x12   : > { %p2068_p6 = pneg %p2350_p5 }
  0x14   : > { %p2080_p8 = pnand %p2078_p7, %p2068_p6 }
  0x16   : > { %p2081_p9 = pneg %p2080_p8 }
  0x18   : > { %p2088_p13 = pnand %p2087_p12, %p2081_p9 }
  0x1a   : > { %2091 = shalt.err (!%p2088_p13)
}
  0x1b   : > { %1954 = dma.hbm_to_vmem [thread:$0]  (!%p2350_p5), %s2821_s1, 128, %s178_s23, [#allocation6]  }
  0x1c   : > { %s2103_s9 = scalar_lea.vmem %s2354_s27, 4096  ;;  %p2111_p7 = scmp.lt.s32.totalorder %s2354_s27, %s2354_s27 }
  0x1d   : > { %p2104_p0 = scmp.ne.s32.totalorder %s2354_s27, %s2103_s9  ;;  %p2112_p8 = scmp.lt.s32.totalorder %s2103_s9, %s2103_s9 }
  0x1f   : > { %p2106_p2 = pnand %p2104_p0, %p2068_p6  ;;  %p2113_p9 = por %p2112_p8, %p2111_p7 }
  0x21   : > { %p2107_p4 = pneg %p2106_p2 }
  0x23   : > { %p2114_p10 = pnand %p2113_p9, %p2107_p4 }
  0x25   : > { %2117 = shalt.err (!%p2114_p10)
}
  0x26   : > { %s2275_s10 = smov 256   ;;  %s2276_s11 = smov 16  }
  0x27   : > { %1960 = dma.hbm_to_vmem [thread:$0]  (!%p2350_p5), %s2823_s3, 4096, %s2354_s27, [#allocation9], %s2275_s10, %s2275_s10, %s2276_s11  }
  0x28   : > { %s2129_s14 = scalar_lea.vmem %s2356_s30, 4096  ;;  %p2137_p0 = scmp.lt.s32.totalorder %s2356_s30, %s2356_s30 }
  0x29   : > { %p2130_p11 = scmp.ne.s32.totalorder %s2356_s30, %s2129_s14  ;;  %p2138_p2 = scmp.lt.s32.totalorder %s2129_s14, %s2129_s14 }
  0x2b   : > { %p2132_p12 = pnand %p2130_p11, %p2068_p6  ;;  %p2139_p4 = por %p2138_p2, %p2137_p0 }
  0x2d   : > { %p2133_p13 = pneg %p2132_p12 }
  0x2f   : > { %p2140_p7 = pnand %p2139_p4, %p2133_p13 }
  0x31   : > { %2143 = shalt.err (!%p2140_p7)
}
  0x32   : > { %1957 = dma.hbm_to_vmem [thread:$0]  (!%p2350_p5), %s2822_s2, 4096, %s2356_s30, [#allocation6], %s2275_s10, %s2275_s10, %s2276_s11  }
  0x33   : > { %s2277_s17 = smov [#allocation10]  }
  0x34   : > { %s213_s22 = sshll.u32 %s2277_s17, 4  ;;  %s214_s22 = int_to_ptr.vmem [resolvable:$true] %s213_s22 }
  0x35   : > { %s2155_s23 = scalar_lea.vmem %s214_s22, 256  ;;  %p2163_p11 = scmp.lt.s32.totalorder %s214_s22, %s214_s22 }
  0x36   : > { %p2156_p8 = scmp.ne.s32.totalorder %s214_s22, %s2155_s23  ;;  %p2164_p12 = scmp.lt.s32.totalorder %s2155_s23, %s2155_s23 }
  0x38   : > { %p2158_p9 = pnand %p2156_p8, %p2068_p6  ;;  %p2165_p13 = por %p2164_p12, %p2163_p11 }
  0x3a   : > { %p2159_p10 = pneg %p2158_p9 }
  0x3c   : > { %p2166_p0 = pnand %p2165_p13, %p2159_p10 }
  0x3e   : > { %2169 = shalt.err (!%p2166_p0)
}
  0x3f   : > { %s2278_s26 = smov 128   ;;  %s2279_s27 = smov 8  }
  0x40   : > { %1963 = dma.hbm_to_vmem [thread:$0]  (!%p2350_p5), %s2824_s4, 256, %s214_s22, [#allocation9], %s2278_s26, %s2278_s26, %s2279_s27  }
  0x41   : > { %s1895_s6 = sadd.s32 4294967294, %s2270_s21   ;;  %s2404_s7 = sadd.s32 1, %s2270_s21  }
  0x42   : > { %s27_s8 = ssub.s32 %s2270_s21, %s2404_s7  ;;  %s30_s9 = sadd.s32 1, %s2266_s20 }
  0x43   : > { %p28_p6 = scmp.eq.s32.totalorder %s27_s8, 0  ;;  %p37_p2 = scmp.ne.s32.totalorder %s2266_s20, %s2262_s19 }
  0x44   : > { %p38_p4 = scmp.eq.s32.totalorder %s2270_s21, 0  ;;  %p43_p7 = scmp.ne.s32.totalorder %s2262_s19, %s2258_s18 }
  0x45   : > { %s2415_s10 = scalar_select %p28_p6, %s2266_s20, %s30_s9  }
  0x46   : > { %p2417_p8 = por %p38_p4, %p37_p2  ;;  %p2423_p5 = por %p2826_p1, %p43_p7 }
  0x47   : > { %p151_p9 = scmp.eq.s32.totalorder %s2337_s24, 7  ;;  %p157_p10 = scmp.eq.s32.totalorder %s1895_s6, 7 }
  0x48   : > { %s2833_s11 = scalar_select %p2423_p5, 1, 0 }
  0x49   : > { %p1976_p11 = scmp.lt.s32.totalorder %s2270_s21, 8  ;;  %s227_s12 = sand.u32 1, %s2266_s20  }
  0x4a   : > { %p2430_p12 = por %p151_p9, %p37_p2  ;;  %p2434_p13 = por %p157_p10, %p43_p7 }
  0x4b   : > { %s1902_s15 = sshll.u32 %s227_s12, 3  ;;  %s1903_s16 = sshll.u32 %s2270_s21, 7 }
  0x4c   : > { %s2834_s13 = scalar_select %p2430_p12, 1, 0 }
  0x4d   : > { %s2835_s14 = scalar_select %p2434_p13, 1, 0 }
  0x4e   : > { %s2442_s23 = scalar_lea.hbm %s2820_s0, %s1903_s16  ;;  %s231_s26 = scalar_lea.vmem [#allocation2], %s1902_s15 }
  0x4f   : > { %s238_s27 = sshll.u32 %s231_s26, 4  ;;  %p2446_p0 = pnand %p1976_p11, %p2417_p8  ;;  %s239_s27 = int_to_ptr.vmem [resolvable:$true] %s238_s27 }
  0x50   : > { %s228_s30 = scalar_lea.sflag [#allocation3], %s227_s12  ;;  %s2170_s6 = scalar_lea.hbm %s2442_s23, 128 }
  0x51   : > { %p2171_p6 = scmp.ne.s32.totalorder %s2442_s23, %s2170_s6  ;;  %p2172_p2 = pneg %p2446_p0 }
  0x52   : > { %s2175_s16 = scalar_lea.hbm %s2820_s0, 1024  ;;  %p2176_p9 = scmp.lt.s32.totalorder %s2442_s23, %s2820_s0 }
  0x53   : > { %p2173_p4 = pnand %p2172_p2, %p2171_p6  ;;  %p2177_p8 = scmp.lt.s32.totalorder %s2175_s16, %s2170_s6 }
  0x55   : > { %p2174_p7 = pneg %p2173_p4  ;;  %p2178_p10 = por %p2177_p8, %p2176_p9 }
  0x57   : > { %p2179_p11 = pnand %p2178_p10, %p2174_p7 }
  0x59   : > { %2182 = shalt.err (!%p2179_p11)
}
  0x5a   : > { %s2183_s28 = scalar_lea.vmem %s239_s27, 128  ;;  %s2280_s12 = smov [#allocation2]  }
  0x5b   : > { %p2184_p1 = scmp.ne.s32.totalorder %s239_s27, %s2183_s28  ;;  %s2188_s22 = sshll.u32 %s2280_s12, 4  ;;  %s2189_s22 = int_to_ptr.vmem [resolvable:$false] %s2188_s22 }
  0x5c   : > { %s2190_s26 = scalar_lea.vmem %s2189_s22, 256  ;;  %p2191_p6 = scmp.lt.s32.totalorder %s239_s27, %s2189_s22 }
  0x5d   : > { %p2186_p13 = pnand %p2184_p1, %p2172_p2  ;;  %p2192_p4 = scmp.lt.s32.totalorder %s2190_s26, %s2183_s28 }
  0x5f   : > { %p2187_p12 = pneg %p2186_p13  ;;  %p2193_p5 = por %p2192_p4, %p2191_p6 }
  0x61   : > { %p2194_p3 = pnand %p2193_p5, %p2187_p12 }
  0x63   : > { %2197 = shalt.err (!%p2194_p3)
}
  0x64   : > { %1967 = dma.hbm_to_vmem [thread:$0]  (!%p2446_p0), %s2442_s23, 128, %s239_s27, %s228_s30  }
  0x65   : > { %p2837_p7 = scmp.ne.s32.totalorder %s2830_s25, 0 }
  0x66   : > { %s2467_s6 = sand.u32 (!%p2837_p7), 1, %s2262_s19   ;;  %p2838_p1 = scmp.ne.s32.totalorder (!%p2837_p7), %s2833_s11, 0 }
  0x67   : > { %247 = sbr.rel (%p2837_p7) target bundleno = 2843 (0xb1b), region = 40  ;;  %s1905_s8 = sshll.u32 (!%p2837_p7), %s2467_s6, 3 }
  0x68   : > { %s250_s9 = scalar_lea.sflag (!%p2837_p7), [#allocation3], %s2467_s6  ;;  %s2473_s16 = scalar_lea.vmem (!%p2837_p7), [#allocation2], %s1905_s8 }
  0x6c   : > { %2241 = dma.done.wait (%p2838_p1), %s250_s9, 128  }
  0x6d   : > { %2243 = vsyncadd (%p2838_p1), %s250_s9, 4294967168  ;;  %p2839_p3 = scmp.eq.s32.totalorder %s2337_s24, 0 }
  0x6f   : > { %2245 = dma.done.wait (%p2839_p3), [#allocation6], 4224   ;;  %p2840_p5 = pmov %p2839_p3 }
  0x70   : > { %p2841_p12 = pmov %p2839_p3 }
  0x71   : > { %2247 = vsyncadd (%p2840_p5), [#allocation6], 4294963072 }
  0x72   : > { %2249 = dma.done.wait (%p2841_p12), [#allocation9], 4352   ;;  %p2842_p13 = pmov %p2839_p3 }
  0x73   : > { %v2281_v0 = vmov 0.0   ;;  %v331_v1 = vld [vmem:[#allocation7 + $0xf8] sm:$0xff]  ;;  %v330_v2 = vld [vmem:[#allocation7 + $0xf0] sm:$0xff]  ;;  %v329_v3 = vld [vmem:[#allocation7 + $0xe8] sm:$0xff]  ;;  %v403_v4 = vlaneseq  ;;  %v2282_v49 = vmov 1966171168  }
  0x74   : > { %2251 = vsyncadd (%p2842_p13), [#allocation9], 4294962944  ;;  %396 = vmatprep.mubr.f32.mxu0 %v2281_v0  ;;  %1921 = vmatprep.subr.mxu1 %v2281_v0  ;;  %v328_v5 = vld [vmem:[#allocation7 + $0xe0] sm:$0xff]  ;;  %v327_v6 = vld [vmem:[#allocation7 + $0xd8] sm:$0xff]  ;;  %v416_v50 = vunpack.c.l.s4 %v2282_v49  ;;  %vm702_vm8 = vcmask 1041409   ;;  %vm704_vm9 = vcmask 1042434  }
  0x75   : > { %332 = vmatprep.subr.mxu0 %v331_v1  ;;  %v326_v7 = vld [vmem:[#allocation7 + $0xd0] sm:$0xff]  ;;  %v325_v8 = vld [vmem:[#allocation7 + $0xc8] sm:$0xff]  ;;  %v2490_v9 = vshrl.u32 %v403_v4, 7  ;;  %v324_v10 = vld [vmem:[#allocation7 + $0xc0] sm:$0xff]  ;;  %vm706_vm10 = vcmask 1043459   ;;  %vm708_vm11 = vcmask 1044484  }
  0x76   : > { %333 = vmatpush1.msra.mxu0 %v330_v2  ;;  %v323_v11 = vld [vmem:[#allocation7 + $0xb8] sm:$0xff]  ;;  %v322_v12 = vld [vmem:[#allocation7 + $0xb0] sm:$0xff]  ;;  %v321_v13 = vld [vmem:[#allocation7 + $0xa8] sm:$0xff]  ;;  %v417_v53 = vunpack.c.0.s8 %v416_v50  ;;  %vm710_vm12 = vcmask 1045509   ;;  %vm712_vm13 = vcmask 1046534   ;;  %vm714_vm14 = vcmask 1047559  }
  0x77   : > { %334 = vmatprep.subr.mxu0 %v329_v3  ;;  %v2493_v14 = vsub.s32 0, %v2490_v9  ;;  %v2496_v15 = vsub.s32 1, %v2490_v9  ;;  %v320_v16 = vld [vmem:[#allocation7 + $0xa0] sm:$0xff]  ;;  %v319_v17 = vld [vmem:[#allocation7 + $0x98] sm:$0xff]  ;;  %v2499_v18 = vsub.s32 2, %v2490_v9  ;;  %v318_v19 = vld [vmem:[#allocation7 + $0x90] sm:$0xff] }
  0x78   : > { %335 = vmatpush1.msra.mxu0 %v328_v5  ;;  %v2501_v20 = vld [vmem:[#allocation5] sm:$0xff]  ;;  %v2504_v21 = vsub.s32 4, %v2490_v9  ;;  %v317_v22 = vld [vmem:[#allocation7 + $0x88] sm:$0xff]  ;;  %v316_v25 = vld [vmem:[#allocation7 + $0x80] sm:$0xff]  ;;  %v2513_v28 = vsub.s32 3, %v2490_v9  ;;  %v2520_v35 = vsub.s32 5, %v2490_v9  ;;  %v2533_v57 = vsub.s32 %v417_v53, %v2490_v9 }
  0x79   : > { %336 = vmatprep.subr.mxu0 %v327_v6  ;;  %v574_v23 = vrot.slane %v2501_v20, %v2496_v15  ;;  %v567_v24 = vrot.slane %v2501_v20, %v2493_v14  ;;  %v315_v26 = vld [vmem:[#allocation7 + $0x78] sm:$0xff]  ;;  %v581_v27 = vrot.slane %v2501_v20, %v2499_v18  ;;  %v314_v29 = vld [vmem:[#allocation7 + $0x70] sm:$0xff]  ;;  %v313_v31 = vld [vmem:[#allocation7 + $0x68] sm:$0xff]  ;;  %vm717_vm15 = vcmask 64512   ;;  %s1914_s25 = sshll.u32 %s2337_s24, 7  ;;  %s295_s11 = scalar_lea.vmem [#allocation11], %s1905_s8 }
  0x7a   : > { %337 = vmatpush1.msra.mxu0 %v326_v7  ;;  %v595_v30 = vrot.slane %v2501_v20, %v2504_v21  ;;  %v312_v32 = vld [vmem:[#allocation7 + $0x60] sm:$0xff]  ;;  %v311_v33 = vld [vmem:[#allocation7 + $0x58] sm:$0xff]  ;;  %v588_v34 = vrot.slane %v2501_v20, %v2513_v28  ;;  %v310_v36 = vld [vmem:[#allocation7 + $0x50] sm:$0xff]  ;;  %v602_v40 = vrot.slane %v2501_v20, %v2520_v35  ;;  %s1787_s23 = sshll.u32 %s295_s11, 4  ;;  %s2784_s30 = scalar_lea.hbm %s2825_s5, %s1914_s25  ;;  %s1788_s23 = int_to_ptr.vmem [resolvable:$true] %s1787_s23 }
  0x7b   : > { %338 = vmatprep.subr.mxu0 %v325_v8  ;;  %576 = vbcast.lane.b32.xlu1 %v574_v23, 256  ;;  %v309_v37 = vld [vmem:[#allocation7 + $0x48] sm:$0xff]  ;;  %v308_v38 = vld [vmem:[#allocation7 + $0x40] sm:$0xff]  ;;  %v307_v39 = vld [vmem:[#allocation7 + $0x38] sm:$0xff]  ;;  %s1774_s15 = scalar_lea.sflag [#allocation4], %s2467_s6  ;;  %s2198_s17 = scalar_lea.vmem %s1788_s23, 128 }
  0x7c   : > { %339 = vmatpush1.msra.mxu0 %v324_v10  ;;  %569 = vbcast.lane.b32.xlu0 %v567_v24, 256  ;;  %v306_v41 = vld [vmem:[#allocation7 + $0x30] sm:$0xff]  ;;  %v305_v42 = vld [vmem:[#allocation7 + $0x28] sm:$0xff]  ;;  %v304_v43 = vld [vmem:[#allocation7 + $0x20] sm:$0xff]  ;;  %p2199_p0 = scmp.ne.s32.totalorder %s1788_s23, %s2198_s17  ;;  %p2843_p2 = scmp.ne.s32.totalorder %s2834_s13, 0 }
  0x7d   : > { %340 = vmatprep.subr.mxu0 %v323_v11  ;;  %v303_v44 = vld [vmem:[#allocation7 + $0x18] sm:$0xff]  ;;  %v302_v45 = vld [vmem:[#allocation7 + $0x10] sm:$0xff]  ;;  %v301_v46 = vld [vmem:[#allocation7 + $0x8] sm:$0xff]  ;;  %s2285_s24 = smov [#allocation11]  }
  0x7e   : > { %341 = vmatpush1.msra.mxu0 %v322_v12  ;;  %v300_v47 = vld [vmem:[#allocation7] sm:$0xff]  ;;  %v296_v48 = vld [vmem:[%s2473_s16] sm:$0xff]  ;;  %p2200_p9 = pnand %p2199_p0, %p2843_p2  ;;  %s2202_s28 = sshll.u32 %s2285_s24, 4  ;;  %s2203_s28 = int_to_ptr.vmem [resolvable:$false] %s2202_s28 }
  0x7f   : > { %342 = vmatprep.subr.mxu0 %v321_v13  ;;  %583 = vbcast.lane.b32.xlu1 %v581_v27, 256  ;;  %v2526_v51 = vld [vmem:[#allocation10] sm:$0xff]  ;;  %s2204_s12 = scalar_lea.vmem %s2203_s28, 256  ;;  %p2205_p10 = scmp.lt.s32.totalorder %s1788_s23, %s2203_s28 }
  0x80   : > { %343 = vmatpush1.msra.mxu0 %v320_v16  ;;  %597 = vbcast.lane.b32.xlu0 %v595_v30, 256  ;;  %v406_v52 = vrot.slane %v2526_v51, %v2493_v14  ;;  %v411_v54 = vrot.slane %v2526_v51, %v2496_v15  ;;  %p2201_p8 = pneg %p2200_p9  ;;  %p2206_p11 = scmp.lt.s32.totalorder %s2204_s12, %s2198_s17 }
  0x81   : > { %344 = vmatprep.subr.mxu0 %v319_v17  ;;  %v538_v17 = vrot.slane %v2526_v51, %v2499_v18 }
  0x82   : > { %345 = vmatpush1.msra.mxu0 %v318_v19  ;;  %p2207_p6 = por %p2206_p11, %p2205_p10 }
  0x83   : > { %346 = vmatprep.subr.mxu0 %v317_v22  ;;  %590 = vbcast.lane.b32.xlu1 %v588_v34, 256 }
  0x84   : > { %347 = vmatpush1.msra.mxu0 %v316_v25  ;;  %p2208_p4 = pnand %p2207_p6, %p2201_p8 }
  0x85   : > { %348 = vmatprep.subr.mxu0 %v315_v26 }
  0x86   : > { %349 = vmatpush1.msra.mxu0 %v314_v29 }
  0x87   : > { %350 = vmatprep.subr.mxu0 %v313_v31  ;;  %604 = vbcast.lane.b32.xlu1 %v602_v40, 256 }
  0x88   : > { %351 = vmatpush1.msra.mxu0 %v312_v32 }
  0x89   : > { %352 = vmatprep.subr.mxu0 %v311_v33 }
  0x8a   : > { %353 = vmatpush1.msra.mxu0 %v310_v36 }
  0x8b   : > { %354 = vmatprep.subr.mxu0 %v309_v37 }
  0x8c   : > { %355 = vmatpush1.msra.mxu0 %v308_v38 }
  0x8d   : > { %356 = vmatprep.subr.mxu0 %v307_v39 }
  0x8e   : > { %357 = vmatpush1.msra.mxu0 %v306_v41 }
  0x8f   : > { %358 = vmatprep.subr.mxu0 %v305_v42 }
  0x90   : > { %359 = vmatpush1.msra.mxu0 %v304_v43 }
  0x91   : > { %360 = vmatprep.subr.mxu0 %v303_v44 }
  0x92   : > { %361 = vmatpush1.msra.mxu0 %v302_v45 }
  0x93   : > { %362 = vmatprep.subr.mxu0 %v301_v46 }
  0x94   : > { %363 = vmatpush1.msra.mxu0 %v300_v47 }
  0x95   : > { %397 = vmatmul.mubr.f32.vlgmr.msra.gmra.mxu0 %v296_v48  ;;  %1926 = vmatprep.subr.mxu0 %v2281_v0 }
 0x155   : > { %v398_v55 = vpop.f32.mrf.mxu0 }
 0x156   : > { %v407_v56 = vadd.f32 %v406_v52, %v398_v55 }
 0x157   : > { %v400_v58 = vpop.f32.mrf.mxu0 }
 0x158   : > { %v412_v59 = vadd.f32 %v411_v54, %v400_v58  ;;  %1922 = vmatpush3.msra.mxu1 %v407_v56 }
 0x15a   : > { %v414_v60 = vcombine.high %v412_v59, %v412_v59  ;;  %v421_v61 = vrot.slane %v412_v59, %v2533_v57 }
 0x15c   : > { %v428_v62 = vrot.slane %v414_v60, %v2533_v57  ;;  %v429_v63 = vcombine.high %v421_v61, %v421_v61  ;;  %v437_v1 = vrot.slane %v421_v61, %v2533_v57 }
 0x15e   : > { %v430_v2 = vcombine.high %v428_v62, %v428_v62  ;;  %v444_v3 = vrot.slane %v428_v62, %v2533_v57  ;;  %v451_v5 = vrot.slane %v429_v63, %v2533_v57  ;;  %v459_v6 = vcombine.high %v437_v1, %v437_v1 }
 0x15f   : > { %v466_v7 = vrot.slane %v437_v1, %v2493_v14  ;;  %v2283_v62 = vmov 0   ;;  %v2552_v63 = vsub.s32 7, %v2490_v9  ;;  %v2555_v1 = vsub.s32 6, %v2490_v9 }
 0x160   : > { %v458_v8 = vrot.slane %v430_v2, %v2533_v57  ;;  %v461_v10 = vcombine.high %v451_v5, %v451_v5  ;;  %v470_v11 = vrot.slane %v451_v5, %v2493_v14  ;;  %v474_v12 = vrot.slane %v459_v6, %v2493_v14  ;;  %2026 = vset.pattern.permute.xlu0 %v2283_v62  ;;  %v2561_v5 = vpop.permute.xlu1 %576 }
 0x161   : > { %v482_v13 = vrot.slane %v444_v3, %v2493_v14  ;;  %v503_v16 = vadd.f32 %v466_v7, %v407_v56  ;;  %v460_v19 = vcombine.high %v444_v3, %v444_v3  ;;  %2027 = vset.pattern.permute.xlu1 %v2283_v62  ;;  %v616_v2 = vrot.slane %v2501_v20, %v2552_v63  ;;  %v2565_v7 = vpop.permute.xlu0 %569 }
 0x162   : > { %v504_v22 = vadd.f32 %v470_v11, %v407_v56  ;;  %v478_v23 = vrot.slane %v461_v10, %v2493_v14  ;;  %v486_v24 = vrot.slane %v458_v8, %v2493_v14  ;;  %v505_v26 = vadd.f32 %v474_v12, %v407_v56 }
 0x163   : > { %vm511_vm0 = vcmp.gt.f32.partialorder %v503_v16, 0.0  ;;  %v519_v25 = vmul.f32 0.2, %v503_v16  ;;  %v507_v27 = vadd.f32 %v482_v13, %v407_v56  ;;  %v462_v29 = vcombine.high %v458_v8, %v458_v8 }
 0x164   : > { %vm512_vm1 = vcmp.gt.f32.partialorder %v504_v22, 0.0  ;;  %v520_v30 = vmul.f32 0.2, %v504_v22  ;;  %v506_v31 = vadd.f32 %v478_v23, %v407_v56  ;;  %vm513_vm2 = vcmp.gt.f32.partialorder %v505_v26, 0.0  ;;  %v2563_v6 = vpop.permute.xlu1 %583 }
 0x165   : > { %v527_v32 = vsel %vm511_vm0, %v503_v16, %v519_v25  ;;  %v521_v33 = vmul.f32 0.2, %v505_v26  ;;  %v508_v34 = vadd.f32 %v486_v24, %v407_v56  ;;  %v523_v40 = vmul.f32 0.2, %v507_v27  ;;  %v2569_v10 = vpop.permute.xlu0 %597 }
 0x166   : > { %v539_v36 = vmul.f32 %v538_v17, %v527_v32  ;;  %vm514_vm3 = vcmp.gt.f32.partialorder %v506_v31, 0.0  ;;  %v522_v37 = vmul.f32 0.2, %v506_v31  ;;  %v528_v39 = vsel %vm512_vm1, %v504_v22, %v520_v30 }
 0x167   : > { %v529_v38 = vsel %vm513_vm2, %v505_v26, %v521_v33  ;;  %vm515_vm4 = vcmp.gt.f32.partialorder %v507_v27, 0.0  ;;  %v490_v42 = vrot.slane %v460_v19, %v2493_v14  ;;  %v524_v44 = vmul.f32 0.2, %v508_v34 }
 0x168   : > { %547 = vadd.xlane.f32.xlu0 %v539_v36  ;;  %v541_v41 = vmul.f32 %v538_v17, %v529_v38  ;;  %v530_v43 = vsel %vm514_vm3, %v506_v31, %v522_v37  ;;  %v494_v45 = vrot.slane %v462_v29, %v2493_v14  ;;  %v540_v46 = vmul.f32 %v538_v17, %v528_v39  ;;  %v2567_v8 = vpop.permute.xlu1 %590 }
 0x169   : > { %vm516_vm5 = vcmp.gt.f32.partialorder %v508_v34, 0.0  ;;  %v509_v47 = vadd.f32 %v490_v42, %v407_v56  ;;  %v531_v48 = vsel %vm515_vm4, %v507_v27, %v523_v40  ;;  %v542_v50 = vmul.f32 %v538_v17, %v530_v43 }
 0x16a   : > { %551 = vadd.xlane.f32.xlu1 %v541_v41  ;;  %v510_v49 = vadd.f32 %v494_v45, %v407_v56  ;;  %v532_v53 = vsel %vm516_vm5, %v508_v34, %v524_v44  ;;  %v543_v55 = vmul.f32 %v538_v17, %v531_v48  ;;  %v609_v3 = vrot.slane %v2501_v20, %v2555_v1 }
 0x16b   : > { %vm517_vm6 = vcmp.gt.f32.partialorder %v509_v47, 0.0  ;;  %v525_v52 = vmul.f32 0.2, %v509_v47  ;;  %v544_v59 = vmul.f32 %v538_v17, %v532_v53  ;;  %v669_v36 = vand.u32 127, %v403_v4 }
 0x16c   : > { %549 = vadd.xlane.f32.xlu0 %v540_v46  ;;  %v526_v54 = vmul.f32 0.2, %v510_v49  ;;  %vm518_vm7 = vcmp.gt.f32.partialorder %v510_v49, 0.0  ;;  %v2571_v11 = vpop.permute.xlu1 %604  ;;  %vm2284_vm0 = vmmov 0  }
 0x16d   : > { %v533_v58 = vsel %vm517_vm6, %v509_v47, %v525_v52  ;;  %v2602_v38 = vsub.s32 %v669_v36, %v2490_v9  ;;  %1923 = vmatprep.mubr.msk.f32.mxu1 %vm2284_vm0, %v2281_v0  ;;  %1928 = vmatprep.mubr.msk.f32.mxu0 %vm2284_vm0, %v2281_v0 }
 0x16e   : > { %553 = vadd.xlane.f32.xlu1 %v542_v50  ;;  %v534_v60 = vsel %vm518_vm7, %v510_v49, %v526_v54  ;;  %v545_v61 = vmul.f32 %v538_v17, %v533_v58 }
 0x16f   : > { %v546_v56 = vmul.f32 %v538_v17, %v534_v60 }
 0x170   : > { %555 = vadd.xlane.f32.xlu0 %v543_v55 }
 0x172   : > { %557 = vadd.xlane.f32.xlu1 %v544_v59 }
 0x174   : > { %559 = vadd.xlane.f32.xlu0 %v545_v61 }
 0x176   : > { %561 = vadd.xlane.f32.xlu1 %v546_v56 }
 0x187   : > { %618 = vbcast.lane.b32.xlu1 %v616_v2, 256 }
 0x18a   : > { %611 = vbcast.lane.b32.xlu0 %v609_v3, 256 }
 0x1f1   : > { %v548_v12 = vpop.xlane.xlu0 %547 }
 0x1f2   : > { %v2574_v13 = vadd.f32 %v2565_v7, %v548_v12 }
 0x1f3   : > { %v552_v16 = vpop.xlane.xlu1 %551 }
 0x1f4   : > { %645 = vperm.xlu0 %2026, %v2574_v13   ;;  %v630_v24 = vadd.f32 %v2563_v6, %v552_v16 }
 0x1f5   : > { %v550_v20 = vpop.xlane.xlu0 %549 }
 0x1f6   : > { %v629_v17 = vadd.f32 %v2561_v5, %v550_v20 }
 0x1f7   : > { %v554_v19 = vpop.xlane.xlu1 %553 }
 0x1f8   : > { %v2579_v22 = vadd.f32 %v2567_v8, %v554_v19  ;;  %648 = vperm.xlu1 %2027, %v629_v17  }
 0x1f9   : > { %v556_v23 = vpop.xlane.xlu0 %555 }
 0x1fa   : > { %654 = vperm.xlu0 %2026, %v2579_v22   ;;  %v632_v29 = vadd.f32 %v2569_v10, %v556_v23 }
 0x1fb   : > { %v558_v25 = vpop.xlane.xlu1 %557 }
 0x1fc   : > { %v2584_v26 = vadd.f32 %v2571_v11, %v558_v25  ;;  %651 = vperm.xlu1 %2027, %v630_v24  }
 0x1fd   : > { %v560_v27 = vpop.xlane.xlu0 %559 }
 0x1fe   : > { %660 = vperm.xlu0 %2026, %v2584_v26  }
 0x1ff   : > { %v562_v30 = vpop.xlane.xlu1 %561 }
 0x200   : > { %657 = vperm.xlu1 %2027, %v632_v29  }
 0x201   : > { %v2588_v31 = vpop.permute.xlu0 %611 }
 0x202   : > { %v2591_v32 = vadd.f32 %v2588_v31, %v560_v27 }
 0x203   : > { %v2593_v33 = vpop.permute.xlu1 %618 }
 0x204   : > { %v2596_v34 = vadd.f32 %v2593_v33, %v562_v30  ;;  %663 = vperm.xlu1 %2027, %v2591_v32  }
 0x206   : > { %666 = vperm.xlu0 %2026, %v2596_v34  }
 0x26f   : > { %v646_v37 = vpop.permute.xlu0 %645 }
 0x270   : > { %v673_v42 = vrot.slane %v646_v37, %v2602_v38 }
 0x273   : > { %v649_v39 = vpop.permute.xlu1 %648 }
 0x274   : > { %v677_v40 = vrot.slane %v649_v39, %v2602_v38 }
 0x275   : > { %v655_v41 = vpop.permute.xlu0 %654 }
 0x276   : > { %v703_v45 = vsel %vm702_vm8, %v677_v40, %v673_v42  ;;  %v685_v4 = vrot.slane %v655_v41, %v2602_v38 }
 0x277   : > { %v652_v43 = vpop.permute.xlu1 %651 }
 0x278   : > { %v681_v44 = vrot.slane %v652_v43, %v2602_v38 }
 0x279   : > { %v661_v47 = vpop.permute.xlu0 %660 }
 0x27a   : > { %v705_v46 = vsel %vm704_vm9, %v681_v44, %v703_v45  ;;  %v693_v52 = vrot.slane %v661_v47, %v2602_v38 }
 0x27b   : > { %v658_v9 = vpop.permute.xlu1 %657  ;;  %v707_v49 = vsel %vm706_vm10, %v685_v4, %v705_v46 }
 0x27c   : > { %v689_v48 = vrot.slane %v658_v9, %v2602_v38 }
 0x27e   : > { %v709_v50 = vsel %vm708_vm11, %v689_v48, %v707_v49 }
 0x27f   : > { %v664_v53 = vpop.permute.xlu1 %663  ;;  %v711_v58 = vsel %vm710_vm12, %v693_v52, %v709_v50 }
 0x280   : > { %v697_v54 = vrot.slane %v664_v53, %v2602_v38 }
 0x281   : > { %v667_v55 = vpop.permute.xlu0 %666 }
 0x282   : > { %v701_v59 = vrot.slane %v667_v55, %v2602_v38  ;;  %v713_v60 = vsel %vm712_vm13, %v697_v54, %v711_v58 }
 0x284   : > { %v715_v61 = vsel %vm714_vm14, %v701_v59, %v713_v60 }
 0x285   : > { %v718_v62 = vsel %vm717_vm15, %v715_v61, -inf }
 0x286   : > { %719 = vmax.xlane.f32.xlu1 %v718_v62 }
 0x30f   : > { %v720_v56 = vpop.xlane.xlu1 %719 }
 0x310   : > { %v725_v2 = vrot.slane %v720_v56, %v2493_v14  ;;  %v729_v3 = vrot.slane %v720_v56, %v2496_v15  ;;  %v733_v12 = vrot.slane %v720_v56, %v2499_v18  ;;  %v737_v23 = vrot.slane %v720_v56, %v2513_v28 }
 0x311   : > { %v741_v30 = vrot.slane %v720_v56, %v2504_v21  ;;  %v745_v39 = vrot.slane %v720_v56, %v2520_v35  ;;  %v753_v43 = vrot.slane %v720_v56, %v2552_v63 }
 0x312   : > { %v762_v16 = vsub.f32 %v2574_v13, %v725_v2  ;;  %v763_v20 = vsub.f32 %v629_v17, %v729_v3  ;;  %v764_v25 = vsub.f32 %v630_v24, %v733_v12  ;;  %v765_v36 = vsub.f32 %v2579_v22, %v737_v23 }
 0x313   : > { %v766_v40 = vsub.f32 %v632_v29, %v741_v30  ;;  %v749_v13 = vrot.slane %v720_v56, %v2555_v1  ;;  %v767_v17 = vsub.f32 %v2584_v26, %v745_v39  ;;  %v769_v29 = vsub.f32 %v2596_v34, %v753_v43 }
 0x314   : > { %v770_v19 = vmul.f32 1.442695, %v762_v16  ;;  %v772_v27 = vmul.f32 1.442695, %v763_v20  ;;  %v774_v37 = vmul.f32 1.442695, %v764_v25 }
 0x315   : > { %v776_v41 = vmul.f32 1.442695, %v765_v36  ;;  %v778_v42 = vmul.f32 1.442695, %v766_v40  ;;  %v768_v44 = vsub.f32 %v2591_v32, %v749_v13  ;;  %v780_v22 = vmul.f32 1.442695, %v767_v17 }
 0x316   : > { %2028 = vpow2.f32 %v770_v19  ;;  %v784_v26 = vmul.f32 1.442695, %v769_v29 }
 0x317   : > { %2030 = vpow2.f32 %v772_v27  ;;  %v782_v46 = vmul.f32 1.442695, %v768_v44 }
 0x318   : > { %2032 = vpow2.f32 %v774_v37 }
 0x319   : > { %2034 = vpow2.f32 %v776_v41 }
 0x31a   : > { %2036 = vpow2.f32 %v778_v42 }
 0x31b   : > { %2038 = vpow2.f32 %v780_v22 }
 0x31c   : > { %2040 = vpow2.f32 %v782_v46 }
 0x31d   : > { %2042 = vpow2.f32 %v784_v26 }
 0x323   : > { %v2029_v24 = vpop.eup %2028 }
 0x324   : > { %795 = vperm.xlu0 %2026, %v2029_v24   ;;  %v2031_v45 = vpop.eup %2030 }
 0x325   : > { %v2033_v4 = vpop.eup %2032 }
 0x326   : > { %v2035_v9 = vpop.eup %2034 }
 0x327   : > { %v2037_v47 = vpop.eup %2036 }
 0x328   : > { %798 = vperm.xlu0 %2026, %v2031_v45   ;;  %v2039_v48 = vpop.eup %2038 }
 0x329   : > { %v2041_v32 = vpop.eup %2040 }
 0x32a   : > { %v2043_v49 = vpop.eup %2042 }
 0x32c   : > { %801 = vperm.xlu0 %2026, %v2033_v4  }
 0x330   : > { %804 = vperm.xlu0 %2026, %v2035_v9  }
 0x334   : > { %807 = vperm.xlu0 %2026, %v2037_v47  }
 0x338   : > { %810 = vperm.xlu0 %2026, %v2039_v48  }
 0x33c   : > { %813 = vperm.xlu0 %2026, %v2041_v32  }
 0x340   : > { %816 = vperm.xlu0 %2026, %v2043_v49  }
 0x39f   : > { %v796_v50 = vpop.permute.xlu0 %795 }
 0x3a0   : > { %v821_v60 = vrot.slane %v796_v50, %v2602_v38 }
 0x3a3   : > { %v799_v52 = vpop.permute.xlu0 %798 }
 0x3a4   : > { %v825_v58 = vrot.slane %v799_v52, %v2602_v38 }
 0x3a6   : > { %v850_v2 = vsel %vm702_vm8, %v825_v58, %v821_v60 }
 0x3a7   : > { %v802_v34 = vpop.permute.xlu0 %801 }
 0x3a8   : > { %v829_v59 = vrot.slane %v802_v34, %v2602_v38 }
 0x3aa   : > { %v851_v12 = vsel %vm704_vm9, %v829_v59, %v850_v2 }
 0x3ab   : > { %v805_v53 = vpop.permute.xlu0 %804 }
 0x3ac   : > { %v833_v61 = vrot.slane %v805_v53, %v2602_v38 }
 0x3ae   : > { %v852_v20 = vsel %vm706_vm10, %v833_v61, %v851_v12 }
 0x3af   : > { %v808_v54 = vpop.permute.xlu0 %807 }
 0x3b0   : > { %v837_v62 = vrot.slane %v808_v54, %v2602_v38 }
 0x3b2   : > { %v853_v19 = vsel %vm708_vm11, %v837_v62, %v852_v20 }
 0x3b3   : > { %v811_v55 = vpop.permute.xlu0 %810 }
 0x3b4   : > { %v841_v3 = vrot.slane %v811_v55, %v2602_v38 }
 0x3b6   : > { %v854_v25 = vsel %vm710_vm12, %v841_v3, %v853_v19 }
 0x3b7   : > { %v814_v56 = vpop.permute.xlu0 %813 }
 0x3b8   : > { %v845_v16 = vrot.slane %v814_v56, %v2602_v38 }
 0x3ba   : > { %v855_v30 = vsel %vm712_vm13, %v845_v16, %v854_v25 }
 0x3bb   : > { %v817_v23 = vpop.permute.xlu0 %816 }
 0x3bc   : > { %v849_v27 = vrot.slane %v817_v23, %v2602_v38 }
 0x3be   : > { %v856_v36 = vsel %vm714_vm14, %v849_v27, %v855_v30  ;;  %v1120_v30 = vld [vmem:[#allocation8 + $0xf8] sm:$0xff] }
 0x3bf   : > { %v858_v37 = vsel %vm717_vm15, %v856_v36, 0.0  ;;  %1121 = vmatprep.subr.mxu1 %v1120_v30  ;;  %v1119_v36 = vld [vmem:[#allocation8 + $0xf0] sm:$0xff] }
 0x3c0   : > { %859 = vadd.xlane.f32.xlu0 %v858_v37  ;;  %v1118_v37 = vld [vmem:[#allocation8 + $0xe8] sm:$0xff] }
 0x449   : > { %v860_v39 = vpop.xlane.xlu0 %859 }
 0x44a   : > { %2044 = vrcp.f32 %v860_v39  ;;  %v1117_v39 = vld [vmem:[#allocation8 + $0xe0] sm:$0xff] }
 0x457   : > { %v2045_v40 = vpop.eup %2044 }
 0x458   : > { %v882_v41 = vrot.slane %v2045_v40, %v2504_v21  ;;  %v866_v13 = vrot.slane %v2045_v40, %v2493_v14  ;;  %v870_v43 = vrot.slane %v2045_v40, %v2496_v15  ;;  %v874_v22 = vrot.slane %v2045_v40, %v2499_v18 }
 0x459   : > { %v878_v46 = vrot.slane %v2045_v40, %v2513_v28  ;;  %v886_v50 = vrot.slane %v2045_v40, %v2520_v35  ;;  %v894_v34 = vrot.slane %v2045_v40, %v2552_v63 }
 0x45a   : > { %v907_v17 = vmul.f32 %v2037_v47, %v882_v41  ;;  %v903_v42 = vmul.f32 %v2029_v24, %v866_v13  ;;  %v904_v44 = vmul.f32 %v2031_v45, %v870_v43  ;;  %v905_v29 = vmul.f32 %v2033_v4, %v874_v22  ;;  %v1115_v41 = vld [vmem:[#allocation8 + $0xd0] sm:$0xff]  ;;  %v1114_v13 = vld [vmem:[#allocation8 + $0xc8] sm:$0xff]  ;;  %v1108_v22 = vld [vmem:[#allocation8 + $0x98] sm:$0xff] }
 0x45b   : > { %v906_v26 = vmul.f32 %v2035_v9, %v878_v46  ;;  %v908_v52 = vmul.f32 %v2039_v48, %v886_v50  ;;  %v890_v47 = vrot.slane %v2045_v40, %v2555_v1  ;;  %v910_v45 = vmul.f32 %v2043_v49, %v894_v34  ;;  %v1116_v40 = vld [vmem:[#allocation8 + $0xd8] sm:$0xff]  ;;  %v1111_v43 = vld [vmem:[#allocation8 + $0xb0] sm:$0xff]  ;;  %v1106_v46 = vld [vmem:[#allocation8 + $0x88] sm:$0xff] }
 0x45c   : > { %936 = vperm.xlu0 %2026, %v907_v17   ;;  %924 = vperm.xlu1 %2027, %v903_v42   ;;  %v1113_v17 = vld [vmem:[#allocation8 + $0xc0] sm:$0xff]  ;;  %v1112_v42 = vld [vmem:[#allocation8 + $0xb8] sm:$0xff] }
 0x45d   : > { %v909_v24 = vmul.f32 %v2041_v32, %v890_v47  ;;  %v1104_v50 = vld [vmem:[#allocation8 + $0x78] sm:$0xff]  ;;  %v1102_v47 = vld [vmem:[#allocation8 + $0x68] sm:$0xff] }
 0x45e   : > { %v1100_v34 = vld [vmem:[#allocation8 + $0x58] sm:$0xff] }
 0x460   : > { %927 = vperm.xlu1 %2027, %v904_v44   ;;  %v1109_v44 = vld [vmem:[#allocation8 + $0xa0] sm:$0xff] }
 0x464   : > { %930 = vperm.xlu1 %2027, %v905_v29   ;;  %v1107_v29 = vld [vmem:[#allocation8 + $0x90] sm:$0xff] }
 0x468   : > { %933 = vperm.xlu1 %2027, %v906_v26   ;;  %v1105_v26 = vld [vmem:[#allocation8 + $0x80] sm:$0xff] }
 0x46c   : > { %939 = vperm.xlu1 %2027, %v908_v52   ;;  %v1103_v52 = vld [vmem:[#allocation8 + $0x70] sm:$0xff] }
 0x470   : > { %942 = vperm.xlu1 %2027, %v909_v24   ;;  %v1101_v24 = vld [vmem:[#allocation8 + $0x60] sm:$0xff] }
 0x474   : > { %945 = vperm.xlu1 %2027, %v910_v45   ;;  %v1099_v45 = vld [vmem:[#allocation8 + $0x50] sm:$0xff] }
 0x4d7   : > { %v925_v4 = vpop.permute.xlu1 %924  ;;  %v937_v60 = vpop.permute.xlu0 %936 }
 0x4d8   : > { %v950_v32 = vrot.slane %v925_v4, %v2602_v38  ;;  %v966_v3 = vrot.slane %v937_v60, %v2602_v38  ;;  %v1098_v4 = vld [vmem:[#allocation8 + $0x48] sm:$0xff]  ;;  %v1089_v60 = vld [vmem:[#allocation8] sm:$0xff] }
 0x4db   : > { %v928_v9 = vpop.permute.xlu1 %927 }
 0x4dc   : > { %v954_v48 = vrot.slane %v928_v9, %v2602_v38  ;;  %v1097_v9 = vld [vmem:[#allocation8 + $0x40] sm:$0xff] }
 0x4de   : > { %v979_v61 = vsel %vm702_vm8, %v954_v48, %v950_v32  ;;  %v1094_v48 = vld [vmem:[#allocation8 + $0x28] sm:$0xff]  ;;  %v1091_v32 = vld [vmem:[#allocation8 + $0x10] sm:$0xff] }
 0x4df   : > { %v931_v53 = vpop.permute.xlu1 %930 }
 0x4e0   : > { %v958_v55 = vrot.slane %v931_v53, %v2602_v38  ;;  %v1096_v53 = vld [vmem:[#allocation8 + $0x38] sm:$0xff] }
 0x4e2   : > { %v980_v62 = vsel %vm704_vm9, %v958_v55, %v979_v61  ;;  %v1093_v55 = vld [vmem:[#allocation8 + $0x20] sm:$0xff]  ;;  %v914_v61 = vrot.slane %v2526_v51, %v2513_v28 }
 0x4e3   : > { %v934_v54 = vpop.permute.xlu1 %933 }
 0x4e4   : > { %v962_v59 = vrot.slane %v934_v54, %v2602_v38  ;;  %v1095_v54 = vld [vmem:[#allocation8 + $0x30] sm:$0xff] }
 0x4e6   : > { %v981_v56 = vsel %vm706_vm10, %v962_v59, %v980_v62  ;;  %v1090_v59 = vld [vmem:[#allocation8 + $0x8] sm:$0xff] }
 0x4e7   : > { %v940_v58 = vpop.permute.xlu1 %939  ;;  %v982_v16 = vsel %vm708_vm11, %v966_v3, %v981_v56 }
 0x4e8   : > { %v970_v2 = vrot.slane %v940_v58, %v2602_v38  ;;  %v1092_v58 = vld [vmem:[#allocation8 + $0x18] sm:$0xff] }
 0x4ea   : > { %v983_v19 = vsel %vm710_vm12, %v970_v2, %v982_v16 }
 0x4eb   : > { %v943_v49 = vpop.permute.xlu1 %942 }
 0x4ec   : > { %v974_v12 = vrot.slane %v943_v49, %v2602_v38 }
 0x4ee   : > { %v984_v25 = vsel %vm712_vm13, %v974_v12, %v983_v19 }
 0x4ef   : > { %v946_v20 = vpop.permute.xlu1 %945 }
 0x4f0   : > { %v978_v23 = vrot.slane %v946_v20, %v2602_v38 }
 0x4f2   : > { %v985_v27 = vsel %vm714_vm14, %v978_v23, %v984_v25 }
 0x4f3   : > { %1924 = vmatmul.mubr.msk.f32.vlgmr.msra.gmra.mxu1 %vm717_vm15, %v985_v27 }
 0x4f4   : > { %1185 = vmatprep.mubr.f32.mxu1 %v2281_v0  ;;  %1122 = vmatpush1.msra.mxu1 %v1119_v36  ;;  %v1110_v0 = vld [vmem:[#allocation8 + $0xa8] sm:$0xff] }
 0x4f5   : > { %1123 = vmatprep.subr.mxu1 %v1118_v37 }
 0x4f6   : > { %1124 = vmatpush1.msra.mxu1 %v1117_v39 }
 0x4f7   : > { %1125 = vmatprep.subr.mxu1 %v1116_v40 }
 0x4f8   : > { %1126 = vmatpush1.msra.mxu1 %v1115_v41 }
 0x4f9   : > { %1127 = vmatprep.subr.mxu1 %v1114_v13 }
 0x4fa   : > { %1128 = vmatpush1.msra.mxu1 %v1113_v17 }
 0x4fb   : > { %1129 = vmatprep.subr.mxu1 %v1112_v42 }
 0x4fc   : > { %1130 = vmatpush1.msra.mxu1 %v1111_v43  ;;  %v1082_v43 = vrot.slane %v2526_v51, %v2504_v21 }
 0x4fd   : > { %1131 = vmatprep.subr.mxu1 %v1110_v0 }
 0x4fe   : > { %1132 = vmatpush1.msra.mxu1 %v1109_v44 }
 0x4ff   : > { %1133 = vmatprep.subr.mxu1 %v1108_v22  ;;  %v1087_v22 = vrot.slane %v2526_v51, %v2520_v35 }
 0x500   : > { %1134 = vmatpush1.msra.mxu1 %v1107_v29 }
 0x501   : > { %1135 = vmatprep.subr.mxu1 %v1106_v46 }
 0x502   : > { %1136 = vmatpush1.msra.mxu1 %v1105_v26  ;;  %v1195_v26 = vrot.slane %v2526_v51, %v2555_v1 }
 0x503   : > { %1137 = vmatprep.subr.mxu1 %v1104_v50  ;;  %v1200_v50 = vrot.slane %v2526_v51, %v2552_v63  ;;  %v2691_v51 = vld [vmem:[#allocation10 + $0x8] sm:$0xff] }
 0x504   : > { %1138 = vmatpush1.msra.mxu1 %v1103_v52 }
 0x505   : > { %1139 = vmatprep.subr.mxu1 %v1102_v47 }
 0x506   : > { %1140 = vmatpush1.msra.mxu1 %v1101_v24 }
 0x507   : > { %1141 = vmatprep.subr.mxu1 %v1100_v34 }
 0x508   : > { %1142 = vmatpush1.msra.mxu1 %v1099_v45 }
 0x509   : > { %1143 = vmatprep.subr.mxu1 %v1098_v4 }
 0x50a   : > { %1144 = vmatpush1.msra.mxu1 %v1097_v9 }
 0x50b   : > { %1145 = vmatprep.subr.mxu1 %v1096_v53 }
 0x50c   : > { %1146 = vmatpush1.msra.mxu1 %v1095_v54 }
 0x50d   : > { %1147 = vmatprep.subr.mxu1 %v1094_v48 }
 0x50e   : > { %1148 = vmatpush1.msra.mxu1 %v1093_v55 }
 0x50f   : > { %1149 = vmatprep.subr.mxu1 %v1092_v58 }
 0x510   : > { %1150 = vmatpush1.msra.mxu1 %v1091_v32 }
 0x511   : > { %1151 = vmatprep.subr.mxu1 %v1090_v59 }
 0x512   : > { %1152 = vmatpush1.msra.mxu1 %v1089_v60 }
 0x5b3   : > { %v1054_v62 = vpop.f32.mrf.mxu1 }
 0x5b4   : > { %v1055_v49 = vadd.f32 %v1054_v62, %v914_v61 }
 0x5b5   : > { %v1925_v56 = vpop.f32.mrf.mxu1 }
 0x5b6   : > { %v1058_v2 = vmax.f32 %v1055_v49, 0.0 }
 0x5b8   : > { %v1059_v3 = vrot.slane %v1058_v2, 4 }
 0x5ba   : > { %v1060_v12 = vadd.f32 %v1059_v3, %v1058_v2  ;;  %v1327_v3 = vrot.slane %v2691_v51, %v2493_v14 }
 0x5bc   : > { %v1061_v16 = vrot.slane %v1060_v12, 2 }
 0x5be   : > { %v1062_v20 = vadd.f32 %v1061_v16, %v1060_v12 }
 0x5c0   : > { %v1063_v19 = vrot.slane %v1062_v20, 1 }
 0x5c2   : > { %v1064_v23 = vadd.f32 %v1063_v19, %v1062_v20 }
 0x5c4   : > { %v1066_v25 = vmul.f32 0.125, %v1064_v23 }
 0x5c6   : > { %v1067_v27 = vsub.f32 %v1058_v2, %v1066_v25 }
 0x5c8   : > { %v1068_v30 = vmul.f32 %v1067_v27, %v1067_v27 }
 0x5ca   : > { %v1069_v36 = vrot.slane %v1068_v30, 4 }
 0x5cc   : > { %v1070_v37 = vadd.f32 %v1069_v36, %v1068_v30 }
 0x5ce   : > { %v1071_v39 = vrot.slane %v1070_v37, 2 }
 0x5d0   : > { %v1072_v40 = vadd.f32 %v1071_v39, %v1070_v37 }
 0x5d2   : > { %v1073_v41 = vrot.slane %v1072_v40, 1 }
 0x5d4   : > { %v1074_v13 = vadd.f32 %v1073_v41, %v1072_v40 }
 0x5d6   : > { %v1075_v17 = vmul.f32 0.125, %v1074_v13 }
 0x5d8   : > { %v1076_v42 = vadd.f32 1e-05, %v1075_v17 }
 0x5da   : > { %2046 = vrsqrt.f32 %v1076_v42 }
 0x5e7   : > { %v2047_v0 = vpop.eup %2046 }
 0x5e8   : > { %v1078_v44 = vmul.f32 %v2047_v0, %v1067_v27 }
 0x5ea   : > { %v1083_v29 = vmul.f32 %v1082_v43, %v1078_v44 }
 0x5ec   : > { %v1088_v46 = vadd.f32 %v1087_v22, %v1083_v29 }
 0x5ee   : > { %1186 = vmatmul.mubr.f32.vlgmr.msra.gmra.mxu1 %v1088_v46 }
 0x6ae   : > { %v1187_v52 = vpop.f32.mrf.mxu1 }
 0x6af   : > { %v1196_v47 = vadd.f32 %v1195_v26, %v1187_v52 }
 0x6b0   : > { %v1189_v24 = vpop.f32.mrf.mxu1 }
 0x6b1   : > { %v1201_v34 = vadd.f32 %v1200_v50, %v1189_v24  ;;  %1927 = vmatpush3.msra.mxu0 %v1196_v47 }
 0x6b3   : > { %v1203_v45 = vcombine.high %v1201_v34, %v1201_v34  ;;  %v1210_v4 = vrot.slane %v1201_v34, %v2533_v57 }
 0x6b5   : > { %v1217_v9 = vrot.slane %v1203_v45, %v2533_v57  ;;  %v1218_v53 = vcombine.high %v1210_v4, %v1210_v4  ;;  %v1226_v54 = vrot.slane %v1210_v4, %v2533_v57 }
 0x6b7   : > { %v1219_v48 = vcombine.high %v1217_v9, %v1217_v9  ;;  %v1233_v55 = vrot.slane %v1217_v9, %v2533_v57  ;;  %v1240_v58 = vrot.slane %v1218_v53, %v2533_v57  ;;  %v1248_v32 = vcombine.high %v1226_v54, %v1226_v54 }
 0x6b8   : > { %v1255_v59 = vrot.slane %v1226_v54, %v2493_v14 }
 0x6b9   : > { %v1247_v60 = vrot.slane %v1219_v48, %v2533_v57  ;;  %v1250_v61 = vcombine.high %v1240_v58, %v1240_v58  ;;  %v1259_v62 = vrot.slane %v1240_v58, %v2493_v14  ;;  %v1263_v49 = vrot.slane %v1248_v32, %v2493_v14 }
 0x6ba   : > { %v1271_v56 = vrot.slane %v1233_v55, %v2493_v14  ;;  %v1292_v2 = vadd.f32 %v1255_v59, %v1196_v47  ;;  %v1249_v12 = vcombine.high %v1233_v55, %v1233_v55 }
 0x6bb   : > { %v1293_v16 = vadd.f32 %v1259_v62, %v1196_v47  ;;  %v1267_v20 = vrot.slane %v1250_v61, %v2493_v14  ;;  %v1275_v19 = vrot.slane %v1247_v60, %v2493_v14  ;;  %v1294_v57 = vadd.f32 %v1263_v49, %v1196_v47 }
 0x6bc   : > { %vm1300_vm1 = vcmp.gt.f32.partialorder %v1292_v2, 0.0  ;;  %v1308_v23 = vmul.f32 0.2, %v1292_v2  ;;  %v1296_v25 = vadd.f32 %v1271_v56, %v1196_v47  ;;  %v1251_v37 = vcombine.high %v1247_v60, %v1247_v60 }
 0x6bd   : > { %vm1301_vm2 = vcmp.gt.f32.partialorder %v1293_v16, 0.0  ;;  %v1309_v27 = vmul.f32 0.2, %v1293_v16  ;;  %v1295_v30 = vadd.f32 %v1267_v20, %v1196_v47  ;;  %v1297_v36 = vadd.f32 %v1275_v19, %v1196_v47 }
 0x6be   : > { %v1316_v39 = vsel %vm1300_vm1, %v1292_v2, %v1308_v23  ;;  %vm1302_vm3 = vcmp.gt.f32.partialorder %v1294_v57, 0.0  ;;  %v1310_v40 = vmul.f32 0.2, %v1294_v57  ;;  %v1312_v0 = vmul.f32 0.2, %v1296_v25 }
 0x6bf   : > { %v1328_v41 = vmul.f32 %v1327_v3, %v1316_v39  ;;  %v1317_v13 = vsel %vm1301_vm2, %v1293_v16, %v1309_v27  ;;  %vm1303_vm4 = vcmp.gt.f32.partialorder %v1295_v30, 0.0  ;;  %v1311_v17 = vmul.f32 0.2, %v1295_v30 }
 0x6c0   : > { %v1329_v42 = vmul.f32 %v1327_v3, %v1317_v13  ;;  %v1318_v43 = vsel %vm1302_vm3, %v1294_v57, %v1310_v40  ;;  %vm1304_vm5 = vcmp.gt.f32.partialorder %v1296_v25, 0.0  ;;  %v1313_v22 = vmul.f32 0.2, %v1297_v36 }
 0x6c1   : > { %1336 = vadd.xlane.f32.xlu1 %v1328_v41  ;;  %v1319_v44 = vsel %vm1303_vm4, %v1295_v30, %v1311_v17  ;;  %v1279_v29 = vrot.slane %v1249_v12, %v2493_v14  ;;  %vm1305_vm6 = vcmp.gt.f32.partialorder %v1297_v36, 0.0  ;;  %v1283_v46 = vrot.slane %v1251_v37, %v2493_v14 }
 0x6c2   : > { %1338 = vadd.xlane.f32.xlu0 %v1329_v42  ;;  %v1330_v26 = vmul.f32 %v1327_v3, %v1318_v43  ;;  %v1331_v52 = vmul.f32 %v1327_v3, %v1319_v44  ;;  %v1320_v24 = vsel %vm1304_vm5, %v1296_v25, %v1312_v0  ;;  %v1321_v45 = vsel %vm1305_vm6, %v1297_v36, %v1313_v22 }
 0x6c3   : > { %v1298_v50 = vadd.f32 %v1279_v29, %v1196_v47  ;;  %v1299_v34 = vadd.f32 %v1283_v46, %v1196_v47  ;;  %v1332_v53 = vmul.f32 %v1327_v3, %v1320_v24  ;;  %v1333_v54 = vmul.f32 %v1327_v3, %v1321_v45 }
 0x6c5   : > { %1340 = vadd.xlane.f32.xlu1 %v1330_v26  ;;  %vm1306_vm7 = vcmp.gt.f32.partialorder %v1298_v50, 0.0  ;;  %v1314_v4 = vmul.f32 0.2, %v1298_v50  ;;  %vm1307_vm0 = vcmp.gt.f32.partialorder %v1299_v34, 0.0  ;;  %v1315_v9 = vmul.f32 0.2, %v1299_v34 }
 0x6c6   : > { %1342 = vadd.xlane.f32.xlu0 %v1331_v52 }
 0x6c7   : > { %v1322_v48 = vsel %vm1306_vm7, %v1298_v50, %v1314_v4  ;;  %v1323_v55 = vsel %vm1307_vm0, %v1299_v34, %v1315_v9 }
 0x6c8   : > { %v1334_v58 = vmul.f32 %v1327_v3, %v1322_v48  ;;  %v1335_v32 = vmul.f32 %v1327_v3, %v1323_v55 }
 0x6c9   : > { %1344 = vadd.xlane.f32.xlu1 %v1332_v53 }
 0x6ca   : > { %1346 = vadd.xlane.f32.xlu0 %v1333_v54 }
 0x6cd   : > { %1348 = vadd.xlane.f32.xlu1 %v1334_v58 }
 0x6ce   : > { %1350 = vadd.xlane.f32.xlu0 %v1335_v32 }
 0x74a   : > { %v1337_v59 = vpop.xlane.xlu1 %1336 }
 0x74b   : > { %v1352_v47 = vadd.f32 %v1337_v59, %v2565_v7  ;;  %v1339_v60 = vpop.xlane.xlu0 %1338 }
 0x74c   : > { %v1353_v61 = vadd.f32 %v1339_v60, %v2561_v5 }
 0x74d   : > { %1369 = vperm.xlu1 %2027, %v1352_v47  }
 0x74e   : > { %v1341_v62 = vpop.xlane.xlu1 %1340  ;;  %1372 = vperm.xlu0 %2026, %v1353_v61  }
 0x74f   : > { %v1354_v49 = vadd.f32 %v1341_v62, %v2563_v6  ;;  %v1343_v56 = vpop.xlane.xlu0 %1342 }
 0x750   : > { %v1355_v7 = vadd.f32 %v1343_v56, %v2567_v8 }
 0x751   : > { %1375 = vperm.xlu1 %2027, %v1354_v49  }
 0x752   : > { %v1345_v2 = vpop.xlane.xlu1 %1344 }
 0x753   : > { %v1356_v12 = vadd.f32 %v1345_v2, %v2569_v10  ;;  %v1347_v16 = vpop.xlane.xlu0 %1346 }
 0x754   : > { %v1357_v3 = vadd.f32 %v1347_v16, %v2571_v11 }
 0x755   : > { %1381 = vperm.xlu1 %2027, %v1356_v12  }
 0x756   : > { %1384 = vperm.xlu0 %2026, %v1357_v3   ;;  %v1349_v19 = vpop.xlane.xlu1 %1348 }
 0x757   : > { %v1351_v20 = vpop.xlane.xlu0 %1350  ;;  %v1358_v6 = vadd.f32 %v1349_v19, %v2588_v31 }
 0x758   : > { %v1359_v5 = vadd.f32 %v1351_v20, %v2593_v33 }
 0x759   : > { %1378 = vperm.xlu1 %2027, %v1355_v7  }
 0x75a   : > { %1390 = vperm.xlu0 %2026, %v1359_v5  }
 0x75d   : > { %1387 = vperm.xlu1 %2027, %v1358_v6  }
 0x7c8   : > { %v1370_v23 = vpop.permute.xlu1 %1369 }
 0x7c9   : > { %v1373_v57 = vpop.permute.xlu0 %1372  ;;  %v1395_v11 = vrot.slane %v1370_v23, %v2602_v38 }
 0x7ca   : > { %v1399_v10 = vrot.slane %v1373_v57, %v2602_v38 }
 0x7cc   : > { %v1376_v25 = vpop.permute.xlu1 %1375  ;;  %v1424_v36 = vsel %vm702_vm8, %v1399_v10, %v1395_v11 }
 0x7cd   : > { %v1403_v8 = vrot.slane %v1376_v25, %v2602_v38 }
 0x7cf   : > { %v1425_v39 = vsel %vm704_vm9, %v1403_v8, %v1424_v36 }
 0x7d0   : > { %v1382_v27 = vpop.permute.xlu1 %1381 }
 0x7d1   : > { %v1385_v30 = vpop.permute.xlu0 %1384  ;;  %v1411_v31 = vrot.slane %v1382_v27, %v2602_v38 }
 0x7d2   : > { %v1415_v40 = vrot.slane %v1385_v30, %v2602_v38 }
 0x7d4   : > { %v1379_v37 = vpop.permute.xlu1 %1378 }
 0x7d5   : > { %v1407_v33 = vrot.slane %v1379_v37, %v2602_v38  ;;  %v1391_v13 = vpop.permute.xlu0 %1390 }
 0x7d6   : > { %v1423_v44 = vrot.slane %v1391_v13, %v2602_v38 }
 0x7d7   : > { %v1426_v41 = vsel %vm706_vm10, %v1407_v33, %v1425_v39 }
 0x7d8   : > { %v1427_v17 = vsel %vm708_vm11, %v1411_v31, %v1426_v41  ;;  %v1388_v42 = vpop.permute.xlu1 %1387 }
 0x7d9   : > { %v1419_v43 = vrot.slane %v1388_v42, %v2602_v38  ;;  %v1428_v0 = vsel %vm710_vm12, %v1415_v40, %v1427_v17 }
 0x7db   : > { %v1429_v22 = vsel %vm712_vm13, %v1419_v43, %v1428_v0 }
 0x7dc   : > { %v1430_v29 = vsel %vm714_vm14, %v1423_v44, %v1429_v22 }
 0x7dd   : > { %v1432_v46 = vsel %vm717_vm15, %v1430_v29, -inf }
 0x7de   : > { %1433 = vmax.xlane.f32.xlu1 %v1432_v46 }
 0x867   : > { %v1434_v26 = vpop.xlane.xlu1 %1433 }
 0x868   : > { %v1439_v50 = vrot.slane %v1434_v26, %v2493_v14  ;;  %v1443_v52 = vrot.slane %v1434_v26, %v2496_v15  ;;  %v1447_v24 = vrot.slane %v1434_v26, %v2499_v18  ;;  %v1451_v9 = vrot.slane %v1434_v26, %v2513_v28 }
 0x869   : > { %v1455_v48 = vrot.slane %v1434_v26, %v2504_v21  ;;  %v1459_v32 = vrot.slane %v1434_v26, %v2520_v35  ;;  %v1463_v62 = vrot.slane %v1434_v26, %v2555_v1 }
 0x86a   : > { %v1476_v34 = vsub.f32 %v1352_v47, %v1439_v50  ;;  %v1477_v45 = vsub.f32 %v1353_v61, %v1443_v52  ;;  %v1478_v53 = vsub.f32 %v1354_v49, %v1447_v24  ;;  %v1479_v55 = vsub.f32 %v1355_v7, %v1451_v9 }
 0x86b   : > { %v1480_v59 = vsub.f32 %v1356_v12, %v1455_v48  ;;  %v1481_v47 = vsub.f32 %v1357_v3, %v1459_v32  ;;  %v1467_v49 = vrot.slane %v1434_v26, %v2552_v63  ;;  %v1482_v2 = vsub.f32 %v1358_v6, %v1463_v62 }
 0x86c   : > { %v1484_v4 = vmul.f32 1.442695, %v1476_v34  ;;  %v1486_v54 = vmul.f32 1.442695, %v1477_v45  ;;  %v1488_v58 = vmul.f32 1.442695, %v1478_v53 }
 0x86d   : > { %v1490_v60 = vmul.f32 1.442695, %v1479_v55  ;;  %v1492_v61 = vmul.f32 1.442695, %v1480_v59  ;;  %v1494_v16 = vmul.f32 1.442695, %v1481_v47  ;;  %v1483_v20 = vsub.f32 %v1359_v5, %v1467_v49 }
 0x86e   : > { %2048 = vpow2.f32 %v1484_v4  ;;  %v1496_v19 = vmul.f32 1.442695, %v1482_v2 }
 0x86f   : > { %2050 = vpow2.f32 %v1486_v54  ;;  %v1498_v23 = vmul.f32 1.442695, %v1483_v20 }
 0x870   : > { %2052 = vpow2.f32 %v1488_v58 }
 0x871   : > { %2054 = vpow2.f32 %v1490_v60 }
 0x872   : > { %2056 = vpow2.f32 %v1492_v61 }
 0x873   : > { %2058 = vpow2.f32 %v1494_v16 }
 0x874   : > { %2060 = vpow2.f32 %v1496_v19 }
 0x875   : > { %2062 = vpow2.f32 %v1498_v23 }
 0x87b   : > { %v2049_v56 = vpop.eup %2048 }
 0x87c   : > { %1509 = vperm.xlu0 %2026, %v2049_v56   ;;  %v2051_v7 = vpop.eup %2050 }
 0x87d   : > { %v2053_v12 = vpop.eup %2052 }
 0x87e   : > { %v2055_v57 = vpop.eup %2054 }
 0x87f   : > { %v2057_v3 = vpop.eup %2056 }
 0x880   : > { %1512 = vperm.xlu0 %2026, %v2051_v7   ;;  %v2059_v25 = vpop.eup %2058 }
 0x881   : > { %v2061_v10 = vpop.eup %2060 }
 0x882   : > { %v2063_v6 = vpop.eup %2062 }
 0x884   : > { %1515 = vperm.xlu0 %2026, %v2053_v12  }
 0x888   : > { %1518 = vperm.xlu0 %2026, %v2055_v57  }
 0x88c   : > { %1521 = vperm.xlu0 %2026, %v2057_v3  }
 0x890   : > { %1524 = vperm.xlu0 %2026, %v2059_v25  }
 0x894   : > { %1527 = vperm.xlu0 %2026, %v2061_v10  }
 0x898   : > { %1530 = vperm.xlu0 %2026, %v2063_v6  }
 0x8f7   : > { %v1510_v27 = vpop.permute.xlu0 %1509 }
 0x8f8   : > { %v1535_v39 = vrot.slane %v1510_v27, %v2602_v38 }
 0x8fb   : > { %v1513_v11 = vpop.permute.xlu0 %1512 }
 0x8fc   : > { %v1539_v37 = vrot.slane %v1513_v11, %v2602_v38 }
 0x8fe   : > { %v1564_v13 = vsel %vm702_vm8, %v1539_v37, %v1535_v39 }
 0x8ff   : > { %v1516_v5 = vpop.permute.xlu0 %1515 }
 0x900   : > { %v1543_v33 = vrot.slane %v1516_v5, %v2602_v38 }
 0x902   : > { %v1565_v42 = vsel %vm704_vm9, %v1543_v33, %v1564_v13 }
 0x903   : > { %v1519_v30 = vpop.permute.xlu0 %1518 }
 0x904   : > { %v1547_v31 = vrot.slane %v1519_v30, %v2602_v38 }
 0x906   : > { %v1566_v0 = vsel %vm706_vm10, %v1547_v31, %v1565_v42 }
 0x907   : > { %v1522_v8 = vpop.permute.xlu0 %1521 }
 0x908   : > { %v1551_v40 = vrot.slane %v1522_v8, %v2602_v38  ;;  %v1628_v8 = vrot.slane %v2691_v51, %v2496_v15 }
 0x90a   : > { %v1567_v44 = vsel %vm708_vm11, %v1551_v40, %v1566_v0 }
 0x90b   : > { %v1525_v36 = vpop.permute.xlu0 %1524 }
 0x90c   : > { %v1555_v17 = vrot.slane %v1525_v36, %v2602_v38 }
 0x90e   : > { %v1568_v29 = vsel %vm710_vm12, %v1555_v17, %v1567_v44 }
 0x90f   : > { %v1528_v41 = vpop.permute.xlu0 %1527 }
 0x910   : > { %v1559_v43 = vrot.slane %v1528_v41, %v2602_v38 }
 0x912   : > { %v1569_v26 = vsel %vm712_vm13, %v1559_v43, %v1568_v29 }
 0x913   : > { %v1531_v22 = vpop.permute.xlu0 %1530 }
 0x914   : > { %v1563_v46 = vrot.slane %v1531_v22, %v2602_v38 }
 0x916   : > { %v1570_v50 = vsel %vm714_vm14, %v1563_v46, %v1569_v26 }
 0x917   : > { %v1572_v52 = vsel %vm717_vm15, %v1570_v50, 0.0 }
 0x918   : > { %1573 = vadd.xlane.f32.xlu0 %v1572_v52 }
 0x9a1   : > { %v1574_v24 = vpop.xlane.xlu0 %1573 }
 0x9a2   : > { %2064 = vrcp.f32 %v1574_v24 }
 0x9af   : > { %v2065_v34 = vpop.eup %2064 }
 0x9b0   : > { %v1596_v45 = vrot.slane %v2065_v34, %v2504_v21  ;;  %v1580_v4 = vrot.slane %v2065_v34, %v2493_v14  ;;  %v1584_v54 = vrot.slane %v2065_v34, %v2496_v15  ;;  %v1588_v55 = vrot.slane %v2065_v34, %v2499_v18 }
 0x9b1   : > { %v1592_v32 = vrot.slane %v2065_v34, %v2513_v28  ;;  %v1600_v60 = vrot.slane %v2065_v34, %v2520_v35  ;;  %v1604_v14 = vrot.slane %v2065_v34, %v2555_v1  ;;  %v1608_v47 = vrot.slane %v2065_v34, %v2552_v63 }
 0x9b2   : > { %v1621_v9 = vmul.f32 %v2057_v3, %v1596_v45  ;;  %v1617_v53 = vmul.f32 %v2049_v56, %v1580_v4  ;;  %v1618_v48 = vmul.f32 %v2051_v7, %v1584_v54  ;;  %v1619_v58 = vmul.f32 %v2053_v12, %v1588_v55 }
 0x9b3   : > { %v1620_v59 = vmul.f32 %v2055_v57, %v1592_v32  ;;  %v1622_v21 = vmul.f32 %v2059_v25, %v1600_v60  ;;  %v1623_v62 = vmul.f32 %v2061_v10, %v1604_v14  ;;  %v1624_v61 = vmul.f32 %v2063_v6, %v1608_v47 }
 0x9b4   : > { %1650 = vperm.xlu0 %2026, %v1621_v9   ;;  %1638 = vperm.xlu1 %2027, %v1617_v53  }
 0x9b8   : > { %1641 = vperm.xlu1 %2027, %v1618_v48  }
 0x9bc   : > { %1644 = vperm.xlu1 %2027, %v1619_v58  }
 0x9c0   : > { %1647 = vperm.xlu1 %2027, %v1620_v59  }
 0x9c4   : > { %1653 = vperm.xlu1 %2027, %v1622_v21  }
 0x9c8   : > { %1656 = vperm.xlu1 %2027, %v1623_v62  }
 0x9cc   : > { %1659 = vperm.xlu1 %2027, %v1624_v61  }
 0xa2f   : > { %v1639_v18 = vpop.permute.xlu1 %1638  ;;  %v1651_v20 = vpop.permute.xlu0 %1650 }
 0xa30   : > { %v1664_v7 = vrot.slane %v1639_v18, %v2602_v38  ;;  %v1680_v3 = vrot.slane %v1651_v20, %v2602_v38 }
 0xa33   : > { %v1642_v56 = vpop.permute.xlu1 %1641 }
 0xa34   : > { %v1668_v28 = vrot.slane %v1642_v56, %v2602_v38 }
 0xa36   : > { %v1693_v63 = vsel %vm702_vm8, %v1668_v28, %v1664_v7 }
 0xa37   : > { %v1645_v49 = vpop.permute.xlu1 %1644 }
 0xa38   : > { %v1672_v16 = vrot.slane %v1645_v49, %v2602_v38 }
 0xa3a   : > { %v1694_v19 = vsel %vm704_vm9, %v1672_v16, %v1693_v63 }
 0xa3b   : > { %v1648_v2 = vpop.permute.xlu1 %1647 }
 0xa3c   : > { %v1676_v1 = vrot.slane %v1648_v2, %v2602_v38 }
 0xa3e   : > { %v1695_v23 = vsel %vm706_vm10, %v1676_v1, %v1694_v19 }
 0xa3f   : > { %v1654_v35 = vpop.permute.xlu1 %1653  ;;  %v1696_v10 = vsel %vm708_vm11, %v1680_v3, %v1695_v23 }
 0xa40   : > { %v1684_v57 = vrot.slane %v1654_v35, %v2602_v38 }
 0xa42   : > { %v1697_v27 = vsel %vm710_vm12, %v1684_v57, %v1696_v10 }
 0xa43   : > { %v1657_v12 = vpop.permute.xlu1 %1656 }
 0xa44   : > { %v1688_v25 = vrot.slane %v1657_v12, %v2602_v38 }
 0xa46   : > { %v1698_v5 = vsel %vm712_vm13, %v1688_v25, %v1697_v27 }
 0xa47   : > { %v1660_v6 = vpop.permute.xlu1 %1659 }
 0xa48   : > { %v1692_v11 = vrot.slane %v1660_v6, %v2602_v38 }
 0xa4a   : > { %v1699_v30 = vsel %vm714_vm14, %v1692_v11, %v1698_v5 }
 0xa4b   : > { %1929 = vmatmul.mubr.msk.f32.vlgmr.msra.gmra.mxu0 %vm717_vm15, %v1699_v30 }
 0xb0b   : > { %v1768_v36 = vpop.f32.mrf.mxu0 }
 0xb0c   : > { %v1769_v37 = vadd.f32 %v1768_v36, %v1628_v8 }
 0xb0d   : > { %v1930_v38 = vpop.f32.mrf.mxu0 }
 0xb0e   : > { %1772 = vst [vmem:[%s295_s11] sm:$0xff] %v1769_v37 }
 0xb0f   : > { %2211 = shalt.err (!%p2208_p4)
}
 0xb10   : > { %s2212_s22 = scalar_lea.hbm %s2784_s30, 128  ;;  %s2216_s8 = scalar_lea.hbm %s2825_s5, 1024 }
 0xb11   : > { %p2213_p7 = scmp.ne.s32.totalorder %s2784_s30, %s2212_s22  ;;  %p2217_p5 = scmp.lt.s32.totalorder %s2784_s30, %s2825_s5 }
 0xb12   : > { %p2218_p12 = scmp.lt.s32.totalorder %s2216_s8, %s2212_s22 }
 0xb13   : > { %p2214_p1 = pnand %p2213_p7, %p2843_p2 }
 0xb14   : > { %p2219_p13 = por %p2218_p12, %p2217_p5 }
 0xb15   : > { %p2215_p3 = pneg %p2214_p1 }
 0xb17   : > { %p2220_p0 = pnand %p2219_p13, %p2215_p3 }
 0xb19   : > { %2223 = shalt.err (!%p2220_p0)
}
 0xb1a   : > { %1949 = dma.vmem_to_hbm [thread:$0]  (%p2843_p2), %s1788_s23, 128, %s2784_s30, %s1774_s15  }
 0xb1b PF: > { %p1981_p9 = scmp.ge.s32.totalorder %s2270_s21, 2  ;;  %s1799_s25 = sand.u32 1, %s2258_s18  }
 0xb1c   : > { %p2844_p8 = scmp.ne.s32.totalorder %s2835_s14, 0  ;;  %s1800_s11 = scalar_lea.sflag [#allocation4], %s1799_s25 }
 0xb1e   : > { %p1969_p10 = pnand %p1981_p9, %p2844_p8 }
 0xb20   : > { %p1970_p11 = pneg %p1969_p10 }
 0xb22   : > { %2253 = dma.done.wait (%p1970_p11), %s1800_s11, 128  }
 0xb23   : > { %2255 = vsyncadd (%p1970_p11), %s1800_s11, 4294967168  ;;  %p20_p6 = scmp.ge.s32.totalorder %s2404_s7, 10   ;;  %s2845_s18 = smov %s2262_s19 }
 0xb24   : > { %s2846_s19 = smov %s2266_s20  ;;  %s2847_s20 = smov %s2415_s10 }
 0xb25   : > { %s2848_s21 = smov %s2404_s7  ;;  %22 = sbr.rel (!%p20_p6) target bundleno = 7 (0x7), region = 101 }
 0xb2a   :  { %1805 = vsyncpa [#allocation3], 1 }
 0xb2b   :  { %1807 = vsyncpa [#allocation3 + $0x1], 1 }
 0xb2c   :  { %1808 = vsyncpa [#allocation6], 1 }
 0xb2d   :  { %1809 = vsyncpa [#allocation9], 1 }
 0xb2e   :  { %1810 = vsyncpa [#allocation4], 1 }
 0xb2f   :  { %1812 = vsyncpa [#allocation4 + $0x1], 1 }

</bundles_post_ra>
